<compile_context>
chip_gen: v7x
topology: tpu7x:2x2x1
jax: 0.10.0
libtpu: 0.0.40
codegen_flags: <defaults>
</compile_context>

<pallas_src>
import functools

import jax
import jax.numpy as jnp
from jax.experimental import pallas as pl
from jax.experimental.pallas import tpu as pltpu


# ---------------------------------------------------------------------------
# Kernel 1: query embedder (mean pool over pixels -> linear proj -> L2 norm)
# ---------------------------------------------------------------------------
def embed_kernel(x_ref, w_ref, b_ref, o_ref):
    # x_ref: (B, C, P)  NCHW image with H*W flattened onto the lane axis
    # w_ref: (C, D)     projection weight
    # b_ref: (1, D)     projection bias
    # o_ref: (B, D)     L2-normalized embedding
    x = x_ref[...].astype(jnp.float32)
    pooled = jnp.mean(x, axis=-1)                       # (B, C)  cheap lane reduce
    emb = jnp.dot(pooled, w_ref[...].astype(jnp.float32),
                  preferred_element_type=jnp.float32) + b_ref[...]
    inv_norm = jax.lax.rsqrt(
        jnp.sum(emb * emb, axis=-1, keepdims=True) + 1e-12)
    o_ref[...] = (emb * inv_norm).astype(o_ref.dtype)


def embed_queries(x_flat, w, b):
    B, C, P = x_flat.shape
    D = w.shape[1]
    return pl.pallas_call(
        embed_kernel,
        out_shape=jax.ShapeDtypeStruct((B, D), jnp.float32),
        grid=(1,),
        in_specs=[
            pl.BlockSpec((B, C, P), lambda i: (0, 0, 0)),
            pl.BlockSpec((C, D), lambda i: (0, 0)),
            pl.BlockSpec((1, D), lambda i: (0, 0)),
        ],
        out_specs=pl.BlockSpec((B, D), lambda i: (0, 0)),
    )(x_flat, w, b)


# ---------------------------------------------------------------------------
# Kernel 2: cosine similarity scan over the (bf16) vector database with the
# optional category filter fused in (pgvector WHERE cat1 = ... AND cat2 = ...)
# ---------------------------------------------------------------------------
def similarity_kernel(codes_ref, q_ref, db_ref, cat1_ref, cat2_ref, o_ref):
    # codes_ref: (2,) int32 in SMEM  [cat1_code, cat2_code], -1 == no filter
    # q_ref    : (B, D)  f32 normalized query embeddings (resident)
    # db_ref   : (tn, D) bf16 tile of normalized database vectors
    # cat1_ref : (1, tn) int32 categories for this tile
    # cat2_ref : (1, tn) int32 categories for this tile
    # o_ref    : (B, tn) f32 masked cosine similarities
    q = q_ref[...].astype(jnp.bfloat16)
    sims = jax.lax.dot_general(                          # contract on D, no .T
        q, db_ref[...],
        dimension_numbers=(((1,), (1,)), ((), ())),
        preferred_element_type=jnp.float32)              # (B, tn) f32 acc
    c1 = codes_ref[0]
    c2 = codes_ref[1]
    keep1 = jnp.logical_or(c1 < 0, cat1_ref[...] == c1)  # (1, tn)
    keep2 = jnp.logical_or(c2 < 0, cat2_ref[...] == c2)
    keep = jnp.logical_and(keep1, keep2)
    o_ref[...] = jnp.where(keep, sims, -jnp.inf)


def cosine_similarities(q_emb, db_emb_bf16, db_cat1, db_cat2,
                        cat1_code, cat2_code, *, tn=512):
    B, D = q_emb.shape
    N, _ = db_emb_bf16.shape
    assert N % tn == 0, "database size must be a multiple of the tile size"
    codes = jnp.stack([jnp.asarray(cat1_code, dtype=jnp.int32),
                       jnp.asarray(cat2_code, dtype=jnp.int32)])
    cat1_2d = db_cat1.reshape(1, N).astype(jnp.int32)
    cat2_2d = db_cat2.reshape(1, N).astype(jnp.int32)

    grid_spec = pltpu.PrefetchScalarGridSpec(
        num_scalar_prefetch=1,                 # the (2,) codes array -> SMEM
        grid=(N // tn,),
        in_specs=[
            pl.BlockSpec((B, D), lambda j, codes: (0, 0)),
            pl.BlockSpec((tn, D), lambda j, codes: (j, 0)),
            pl.BlockSpec((1, tn), lambda j, codes: (0, j)),
            pl.BlockSpec((1, tn), lambda j, codes: (0, j)),
        ],
        out_specs=pl.BlockSpec((B, tn), lambda j, codes: (0, j)),
    )
    return pl.pallas_call(
        similarity_kernel,
        out_shape=jax.ShapeDtypeStruct((B, N), jnp.float32),
        grid_spec=grid_spec,
        compiler_params=pltpu.CompilerParams(
            dimension_semantics=("parallel",),         # shardable across TCs
            vmem_limit_bytes=32 * 1024 * 1024),        # same budget on all gens
    )(codes, q_emb, db_emb_bf16, cat1_2d, cat2_2d)


# ---------------------------------------------------------------------------
# ImageRetrieval.forward equivalent
# ---------------------------------------------------------------------------
@functools.partial(jax.jit, static_argnames=("top_k",))
def image_retrieval_forward(query_image_nchw, w, b, db_vectors_bf16,
                            db_cat1, db_cat2, cat1_code, cat2_code, top_k=8):
    # 1) model(query_image): NCHW -> (B, C, H*W) is a free reshape (no transpose)
    B, C, H, W = query_image_nchw.shape
    x_flat = query_image_nchw.reshape(B, C, H * W)
    q_emb = embed_queries(x_flat, w, b)                          # (B, D) f32

    # 2) database.search_similar_vectors: bf16 DB scan + fused category filter
    sims = cosine_similarities(q_emb, db_vectors_bf16,
                               db_cat1, db_cat2, cat1_code, cat2_code)

    # 3) top-k most similar rows (glue). If no row matches the category filter,
    #    all scores are -inf and the ids are arbitrary (SQL would return 0 rows).
    top_sims, top_ids = jax.lax.top_k(sims, top_k)
    return {"result_ids": top_ids, "result_distances": top_sims}
    # TODO(synk): retrieved_image_file_paths (PIL open/save, os.makedirs,
    # shutil.rmtree, pgvector connection info) is host-side I/O with no Pallas
    # equivalent.


if __name__ == "__main__":
    key = jax.random.PRNGKey(0)
    k_img, k_w, k_b, k_db, k_c1, k_c2 = jax.random.split(key, 6)

    # small, deterministic synthetic setup
    B, C, H, W = 2, 4, 16, 16     # query images, NCHW like PyTorch
    D = 32                        # embedding dim
    N = 2048                      # database size (multiple of tn=512)
    TOP_K = 8

    query_image = jax.random.normal(k_img, (B, C, H, W), dtype=jnp.float32)

    # deterministic "model" parameters (pixel-wise projection embedder)
    w = (jax.random.normal(k_w, (C, D), dtype=jnp.float32) /
         jnp.sqrt(jnp.float32(C)))
    b = 0.01 * jax.random.normal(k_b, (1, D), dtype=jnp.float32)

    # deterministic synthetic vector DB: L2-normalized rows, stored as bf16
    db_raw = jax.random.normal(k_db, (N, D), dtype=jnp.float32)
    db_f32 = db_raw / jnp.linalg.norm(db_raw, axis=-1, keepdims=True)
    db_bf16 = db_f32.astype(jnp.bfloat16)
    db_cat1 = jax.random.randint(k_c1, (N,), 0, 4, dtype=jnp.int32)
    db_cat2 = jax.random.randint(k_c2, (N,), 0, 3, dtype=jnp.int32)
    cat1_code = jnp.int32(1)      # emulate optional cat1_code filter
    cat2_code = jnp.int32(-1)     # -1 sentinel == no cat2 filter (None)

    out = image_retrieval_forward(query_image, w, b, db_bf16,
                                  db_cat1, db_cat2, cat1_code, cat2_code,
                                  top_k=TOP_K)
    out = jax.tree_util.tree_map(jax.block_until_ready, out)

    # ----- reference check in plain JAX (mirrors the kernel's bf16 storage) --
    pooled = jnp.mean(query_image.reshape(B, C, H * W), axis=-1)   # (B, C)
    ref_emb = pooled @ w + b
    ref_emb = ref_emb / jnp.linalg.norm(ref_emb, axis=-1, keepdims=True)
    q_bf = ref_emb.astype(jnp.bfloat16).astype(jnp.float32)
    ref_sims = q_bf @ db_bf16.astype(jnp.float32).T
    mask = db_cat1[None, :] == cat1_code                 # cat2 filter disabled
    ref_sims = jnp.where(mask, ref_sims, -jnp.inf)
    ref_top_sims, ref_top_ids = jax.lax.top_k(ref_sims, TOP_K)

    assert jnp.allclose(out["result_distances"], ref_top_sims, atol=5e-3), \
        "similarity values mismatch"
    # robust id check: the rows the kernel picked must score like the true top-k
    picked_ref_vals = jnp.take_along_axis(ref_sims, out["result_ids"], axis=1)
    assert jnp.allclose(picked_ref_vals, ref_top_sims, atol=5e-3), \
        "top-k ids are not the most similar rows"

    print("KERNEL_OK")
</pallas_src>

<mosaic_0001>
module attributes {stable_mosaic.version = 11 : i64} {
  func.func @embed_kernel(%arg0: i32, %arg1: memref<2x4x256xf32, #tpu.memory_space<vmem>>, %arg2: memref<4x32xf32, #tpu.memory_space<vmem>>, %arg3: memref<1x32xf32, #tpu.memory_space<vmem>>, %arg4: memref<2x32xf32, #tpu.memory_space<vmem>>) attributes {dimension_semantics = [#tpu.dimension_semantics<arbitrary>], iteration_bounds = array<i64: 1>, scalar_prefetch = 0 : i64, scratch_operands = 0 : i64, tpu.core_type = #tpu.core_type<tc>, window_params = [{pipeline_mode = #tpu.pipeline_mode<synchronous>, transform_indices = @transform_0, window_bounds = array<i64: 2, 4, 256>}, {pipeline_mode = #tpu.pipeline_mode<synchronous>, transform_indices = @transform_1, window_bounds = array<i64: 4, 32>}, {pipeline_mode = #tpu.pipeline_mode<synchronous>, transform_indices = @transform_2, window_bounds = array<i64: 1, 32>}, {pipeline_mode = #tpu.pipeline_mode<synchronous>, transform_indices = @transform_3, window_bounds = array<i64: 2, 32>}]} {
    %c0 = arith.constant 0 : index
    %c0_0 = arith.constant 0 : index
    %c0_1 = arith.constant 0 : index
    %0 = vector.load %arg1[%c0, %c0_0, %c0_1] : memref<2x4x256xf32, #tpu.memory_space<vmem>>, vector<2x4x256xf32>
    %cst = arith.constant dense<0.000000e+00> : vector<2x4xf32>
    %1 = vector.multi_reduction <add>, %0, %cst [2] : vector<2x4x256xf32> to vector<2x4xf32>
    %cst_2 = arith.constant 2.560000e+02 : f32
    %2 = vector.broadcast %cst_2 : f32 to vector<2x4xf32>
    %3 = arith.divf %1, %2 : vector<2x4xf32>
    %c0_3 = arith.constant 0 : index
    %c0_4 = arith.constant 0 : index
    %4 = vector.load %arg2[%c0_3, %c0_4] : memref<4x32xf32, #tpu.memory_space<vmem>>, vector<4x32xf32>
    %cst_5 = arith.constant dense<0.000000e+00> : vector<2x32xf32>
    %5 = tpu.matmul %3, %4, %cst_5 {dimension_numbers = #tpu.dot_dimension_numbers<[1], [0], [0], [1], [0, 0, 1, 1], [], []>} : vector<2x4xf32>, vector<4x32xf32>, vector<2x32xf32> -> vector<2x32xf32>
    %c0_6 = arith.constant 0 : index
    %c0_7 = arith.constant 0 : index
    %6 = vector.load %arg3[%c0_6, %c0_7] : memref<1x32xf32, #tpu.memory_space<vmem>>, vector<1x32xf32>
    %7 = vector.broadcast %6 : vector<1x32xf32> to vector<2x32xf32>
    %8 = arith.addf %5, %7 : vector<2x32xf32>
    %9 = arith.mulf %8, %8 : vector<2x32xf32>
    %cst_8 = arith.constant dense<0.000000e+00> : vector<2xf32>
    %10 = vector.multi_reduction <add>, %9, %cst_8 [1] : vector<2x32xf32> to vector<2xf32>
    %11 = vector.shape_cast %10 : vector<2xf32> to vector<2x1xf32>
    %cst_9 = arith.constant 9.99999996E-13 : f32
    %12 = vector.broadcast %cst_9 : f32 to vector<2x1xf32>
    %13 = arith.addf %11, %12 : vector<2x1xf32>
    %14 = math.rsqrt %13 : vector<2x1xf32>
    %15 = vector.broadcast %14 : vector<2x1xf32> to vector<2x32xf32>
    %16 = arith.mulf %8, %15 : vector<2x32xf32>
    %c0_10 = arith.constant 0 : index
    %c0_11 = arith.constant 0 : index
    %17 = vector.load %arg4[%c0_10, %c0_11] : memref<2x32xf32, #tpu.memory_space<vmem>>, vector<2x32xf32>
    tpu.vector_store %arg4[%c0_10, %c0_11], %16 {strides = array<i32>} : memref<2x32xf32, #tpu.memory_space<vmem>>, vector<2x32xf32>,
    return
  }
  func.func @transform_0(%arg0: i32) -> (i32, i32, i32) {
    %c0_i32 = arith.constant 0 : i32
    %c0_i32_0 = arith.constant 0 : i32
    %c0_i32_1 = arith.constant 0 : i32
    %c0_i32_2 = arith.constant 0 : i32
    return %c0_i32, %c0_i32_0, %c0_i32_1 : i32, i32, i32
  }
  func.func @transform_1(%arg0: i32) -> (i32, i32) {
    %c0_i32 = arith.constant 0 : i32
    %c0_i32_0 = arith.constant 0 : i32
    %c0_i32_1 = arith.constant 0 : i32
    return %c0_i32, %c0_i32_0 : i32, i32
  }
  func.func @transform_2(%arg0: i32) -> (i32, i32) {
    %c0_i32 = arith.constant 0 : i32
    %c0_i32_0 = arith.constant 0 : i32
    %c0_i32_1 = arith.constant 0 : i32
    return %c0_i32, %c0_i32_0 : i32, i32
  }
  func.func @transform_3(%arg0: i32) -> (i32, i32) {
    %c0_i32 = arith.constant 0 : i32
    %c0_i32_0 = arith.constant 0 : i32
    %c0_i32_1 = arith.constant 0 : i32
    return %c0_i32, %c0_i32_0 : i32, i32
  }
}

module attributes {stable_mosaic.version = 11 : i64} {
  func.func @similarity_kernel(%arg0: i32, %arg1: memref<2xi32, #tpu.memory_space<smem>>, %arg2: memref<2x32xf32, #tpu.memory_space<vmem>>, %arg3: memref<512x32xbf16, #tpu.memory_space<vmem>>, %arg4: memref<1x512xi32, #tpu.memory_space<vmem>>, %arg5: memref<1x512xi32, #tpu.memory_space<vmem>>, %arg6: memref<2x512xf32, #tpu.memory_space<vmem>>) attributes {dimension_semantics = [#tpu.dimension_semantics<parallel>], iteration_bounds = array<i64: 4>, scalar_prefetch = 1 : i64, scratch_operands = 0 : i64, tpu.core_type = #tpu.core_type<tc>, window_params = [{pipeline_mode = #tpu.pipeline_mode<synchronous>, transform_indices = @transform_0, window_bounds = array<i64: 2, 32>}, {transform_indices = @transform_1, window_bounds = array<i64: 512, 32>}, {transform_indices = @transform_2, window_bounds = array<i64: 1, 512>}, {transform_indices = @transform_3, window_bounds = array<i64: 1, 512>}, {transform_indices = @transform_4, window_bounds = array<i64: 2, 512>}]} {
    %c0 = arith.constant 0 : index
    %c0_0 = arith.constant 0 : index
    %0 = vector.load %arg2[%c0, %c0_0] : memref<2x32xf32, #tpu.memory_space<vmem>>, vector<2x32xf32>
    %1 = arith.truncf %0 : vector<2x32xf32> to vector<2x32xbf16>
    %c0_1 = arith.constant 0 : index
    %c0_2 = arith.constant 0 : index
    %2 = vector.load %arg3[%c0_1, %c0_2] : memref<512x32xbf16, #tpu.memory_space<vmem>>, vector<512x32xbf16>
    %cst = arith.constant dense<0.000000e+00> : vector<2x512xf32>
    %3 = tpu.matmul %1, %2, %cst {dimension_numbers = #tpu.dot_dimension_numbers<[1], [1], [0], [0], [0, 0, 1, 0], [], []>} : vector<2x32xbf16>, vector<512x32xbf16>, vector<2x512xf32> -> vector<2x512xf32>
    %c0_3 = arith.constant 0 : index
    %4 = memref.load %arg1[%c0_3] : memref<2xi32, #tpu.memory_space<smem>>
    %c1 = arith.constant 1 : index
    %5 = memref.load %arg1[%c1] : memref<2xi32, #tpu.memory_space<smem>>
    %c0_i32 = arith.constant 0 : i32
    %6 = arith.cmpi slt, %4, %c0_i32 : i32
    %c0_4 = arith.constant 0 : index
    %c0_5 = arith.constant 0 : index
    %7 = vector.load %arg4[%c0_4, %c0_5] : memref<1x512xi32, #tpu.memory_space<vmem>>, vector<1x512xi32>
    %8 = vector.broadcast %4 : i32 to vector<1x512xi32>
    %9 = arith.cmpi eq, %7, %8 : vector<1x512xi32>
    %10 = vector.broadcast %6 : i1 to vector<1x512xi1>
    %11 = arith.ori %10, %9 : vector<1x512xi1>
    %c0_i32_6 = arith.constant 0 : i32
    %12 = arith.cmpi slt, %5, %c0_i32_6 : i32
    %c0_7 = arith.constant 0 : index
    %c0_8 = arith.constant 0 : index
    %13 = vector.load %arg5[%c0_7, %c0_8] : memref<1x512xi32, #tpu.memory_space<vmem>>, vector<1x512xi32>
    %14 = vector.broadcast %5 : i32 to vector<1x512xi32>
    %15 = arith.cmpi eq, %13, %14 : vector<1x512xi32>
    %16 = vector.broadcast %12 : i1 to vector<1x512xi1>
    %17 = arith.ori %16, %15 : vector<1x512xi1>
    %18 = arith.andi %11, %17 : vector<1x512xi1>
    %cst_9 = arith.constant 0xFF800000 : f32
    %19 = vector.shape_cast %18 : vector<1x512xi1> to vector<1x512xi1>
    %20 = vector.broadcast %19 : vector<1x512xi1> to vector<2x512xi1>
    %21 = vector.broadcast %cst_9 : f32 to vector<2x512xf32>
    %22 = arith.select %20, %3, %21 : vector<2x512xi1>, vector<2x512xf32>
    %c0_10 = arith.constant 0 : index
    %c0_11 = arith.constant 0 : index
    %23 = vector.load %arg6[%c0_10, %c0_11] : memref<2x512xf32, #tpu.memory_space<vmem>>, vector<2x512xf32>
    tpu.vector_store %arg6[%c0_10, %c0_11], %22 {strides = array<i32>} : memref<2x512xf32, #tpu.memory_space<vmem>>, vector<2x512xf32>,
    return
  }
  func.func @transform_0(%arg0: i32, %arg1: memref<2xi32, #tpu.memory_space<smem>>) -> (i32, i32) {
    %c0_i32 = arith.constant 0 : i32
    %c0_i32_0 = arith.constant 0 : i32
    %c0_i32_1 = arith.constant 0 : i32
    return %c0_i32, %c0_i32_0 : i32, i32
  }
  func.func @transform_1(%arg0: i32, %arg1: memref<2xi32, #tpu.memory_space<smem>>) -> (i32, i32) {
    %c0_i32 = arith.constant 0 : i32
    %c0_i32_0 = arith.constant 0 : i32
    return %arg0, %c0_i32 : i32, i32
  }
  func.func @transform_2(%arg0: i32, %arg1: memref<2xi32, #tpu.memory_space<smem>>) -> (i32, i32) {
    %c0_i32 = arith.constant 0 : i32
    %c0_i32_0 = arith.constant 0 : i32
    return %c0_i32, %arg0 : i32, i32
  }
  func.func @transform_3(%arg0: i32, %arg1: memref<2xi32, #tpu.memory_space<smem>>) -> (i32, i32) {
    %c0_i32 = arith.constant 0 : i32
    %c0_i32_0 = arith.constant 0 : i32
    return %c0_i32, %arg0 : i32, i32
  }
  func.func @transform_4(%arg0: i32, %arg1: memref<2xi32, #tpu.memory_space<smem>>) -> (i32, i32) {
    %c0_i32 = arith.constant 0 : i32
    %c0_i32_0 = arith.constant 0 : i32
    return %c0_i32, %arg0 : i32, i32
  }
}

</mosaic_0001>

<bundles_post_ra>
// kernel: custom-call
= control target key start
LH: loop header
LB: loop body
LE: loop exit
PB: predicated region body
PF: predicated region fallthrough
CT: control target
= control target key end

     0   :  { %5 = vsyncpa [#allocation9], 0  ;;  %s1278_s0 = inlined_call_operand.vmem [shape: f32[2,2048], index: 0, kind: input, shape index: {}]   ;;  %s1279_s1 = inlined_call_operand.hbm [shape: f32[2,8], index: 1, kind: output, shape index: {0}]   ;;  %s1280_s2 = inlined_call_operand.hbm [shape: s32[2,8], index: 2, kind: output, shape index: {1}]  }
   0x1   :  { %6 = vsyncpa [#allocation12], 0  ;;  %v1127_v0 = vmov 2147483648   ;;  %v1128_v1 = vmov 2147483647  }
   0x2   :  { %8 = vst [vmem:[#allocation13] sm:$0xff] %v1127_v0  ;;  %9 = vst [vmem:[#allocation15] sm:$0xff] %v1128_v1 }
   0x3   :  { %v39_v2 = vlaneseq  ;;  %v26_v3 = vld [vmem:[%s1278_s0] sm:$0xff]  ;;  %v1129_v4 = vmov 2147483648   ;;  %v1130_v5 = vmov 2147483647   ;;  %v28_v6 = vld [vmem:[%s1278_s0 + $0x8] sm:$0xff]  ;;  %v30_v7 = vld [vmem:[%s1278_s0 + $0x10] sm:$0xff] }
   0x4   :  { %104 = vst [vmem:[#allocation14] sm:$0xff] %v1129_v4  ;;  %105 = vst [vmem:[#allocation16] sm:$0xff] %v1130_v5  ;;  %v32_v8 = vld [vmem:[%s1278_s0 + $0x18] sm:$0xff]  ;;  %vm49_vm0 = vcmp.lt.s32.totalorder %v26_v3, 0  ;;  %v50_v12 = vsub.s32 2147483647, %v26_v3 }
   0x5   :  { %v1166_v9 = vshrl.u32 %v39_v2, 7  ;;  %v40_v10 = vand.u32 127, %v39_v2  ;;  %v59_v13 = vsub.s32 2147483647, %v28_v6  ;;  %v68_v14 = vsub.s32 2147483647, %v30_v7 }
   0x6   :  { %v77_v15 = vsub.s32 2147483647, %v32_v8  ;;  %vm58_vm1 = vcmp.lt.s32.totalorder %v28_v6, 0  ;;  %vm67_vm2 = vcmp.lt.s32.totalorder %v30_v7, 0  ;;  %vm76_vm3 = vcmp.lt.s32.totalorder %v32_v8, 0  ;;  %s1170_s0 = smov 0  }
   0x7   :  { %v43_v11 = vshrl.u32 %v1166_v9, 1  ;;  %v51_v18 = vsel %vm49_vm0, %v50_v12, %v26_v3  ;;  %v60_v19 = vsel %vm58_vm1, %v59_v13, %v28_v6  ;;  %v69_v20 = vsel %vm67_vm2, %v68_v14, %v30_v7 }
   0x8   :  { %v78_v21 = vsel %vm76_vm3, %v77_v15, %v32_v8 }
   0x9   :  { %v45_v16 = vmul.u32 128, %v43_v11 }
   0xb   :  { %v46_v17 = vadd.s32 %v45_v16, %v40_v10 }
   0xd   :  { %vm53_vm4 = vcmp.lt.s32.totalorder %v46_v17, 2048  ;;  %v61_v22 = vadd.s32 512, %v46_v17  ;;  %v70_v23 = vadd.s32 1024, %v46_v17  ;;  %v79_v24 = vadd.s32 1536, %v46_v17  ;;  %93 = vst [vmem:[#allocation18] sm:$0xff] %v46_v17 }
   0xe   :  { %v54_v25 = vsel %vm53_vm4, %v51_v18, 2147483648 }
   0xf   :  { %55 = vst [vmem:[#allocation17] sm:$0xff] %v54_v25  ;;  %vm62_vm5 = vcmp.lt.s32.totalorder %v61_v22, 2048  ;;  %vm71_vm6 = vcmp.lt.s32.totalorder %v70_v23, 2048  ;;  %vm80_vm7 = vcmp.lt.s32.totalorder %v79_v24, 2048  ;;  %96 = vst [vmem:[#allocation18 + $0x8] sm:$0xff] %v61_v22 }
  0x10   :  { %99 = vst [vmem:[#allocation18 + $0x10] sm:$0xff] %v70_v23  ;;  %102 = vst [vmem:[#allocation18 + $0x18] sm:$0xff] %v79_v24  ;;  %v63_v26 = vsel %vm62_vm5, %v60_v19, 2147483648  ;;  %v72_v27 = vsel %vm71_vm6, %v69_v20, 2147483648  ;;  %v81_v28 = vsel %vm80_vm7, %v78_v21, 2147483648 }
  0x11   :  { %64 = vst [vmem:[#allocation17 + $0x8] sm:$0xff] %v63_v26  ;;  %73 = vst [vmem:[#allocation17 + $0x10] sm:$0xff] %v72_v27 }
  0x12   :  { %82 = vst [vmem:[#allocation17 + $0x18] sm:$0xff] %v81_v28 }
  0x13 LB: > { %s465_s17 = scalar_lea.vmem [#allocation14], %s1125_s0  ;;  %s467_s18 = scalar_lea.vmem [#allocation16], %s1125_s0  ;;  %s1125_s0 = sphi %s1170_s0, %s112_s0  }
  0x14   : > { %v114_v30 = vld [vmem:[#allocation18] sm:$0xff]  ;;  %s112_s0 = sadd.s32 1, %s1125_s0  }
  0x15   : > { %p109_p2 = scmp.ge.s32.totalorder %s112_s0, 8  }
  0x16   : > { %v113_v29 = vld [vmem:[#allocation17] sm:$0xff]  ;;  %v119_v32 = vld [vmem:[#allocation18 + $0x8] sm:$0xff]  ;;  %s1136_s0 = smov (%p109_p2), [#allocation8]  }
  0x17   : > { %vm123_vm10 = vcmp.lt.s32.totalorder %v119_v32, %v114_v30  ;;  %v132_v34 = vld [vmem:[#allocation18 + $0x10] sm:$0xff]  ;;  %v145_v38 = vld [vmem:[#allocation18 + $0x18] sm:$0xff] }
  0x18   : > { %v117_v31 = vld [vmem:[#allocation17 + $0x8] sm:$0xff]  ;;  %v130_v33 = vld [vmem:[#allocation17 + $0x10] sm:$0xff] }
  0x19   : > { %vm121_vm8 = vcmp.gt.s32.totalorder %v117_v31, %v113_v29  ;;  %vm122_vm9 = vcmp.eq.s32.totalorder %v117_v31, %v113_v29  ;;  %v143_v37 = vld [vmem:[#allocation17 + $0x18] sm:$0xff] }
  0x1a   : > { %vm124_vm11 = vmand %vm122_vm9, %vm123_vm10 }
  0x1b   : > { %vm125_vm12 = vmor %vm121_vm8, %vm124_vm11 }
  0x1c   : > { %v126_v35 = vsel %vm125_vm12, %v117_v31, %v113_v29  ;;  %v127_v36 = vsel %vm125_vm12, %v119_v32, %v114_v30 }
  0x1d   : > { %vm134_vm13 = vcmp.gt.s32.totalorder %v130_v33, %v126_v35  ;;  %vm135_vm14 = vcmp.eq.s32.totalorder %v130_v33, %v126_v35  ;;  %vm136_vm15 = vcmp.lt.s32.totalorder %v132_v34, %v127_v36 }
  0x1e   : > { %vm137_vm0 = vmand %vm135_vm14, %vm136_vm15 }
  0x1f   : > { %vm138_vm1 = vmor %vm134_vm13, %vm137_vm0 }
  0x20   : > { %v139_v39 = vsel %vm138_vm1, %v130_v33, %v126_v35  ;;  %v140_v40 = vsel %vm138_vm1, %v132_v34, %v127_v36 }
  0x21   : > { %vm147_vm2 = vcmp.gt.s32.totalorder %v143_v37, %v139_v39  ;;  %vm148_vm3 = vcmp.eq.s32.totalorder %v143_v37, %v139_v39  ;;  %vm149_vm4 = vcmp.lt.s32.totalorder %v145_v38, %v140_v40 }
  0x22   : > { %vm150_vm5 = vmand %vm148_vm3, %vm149_vm4 }
  0x23   : > { %vm151_vm6 = vmor %vm147_vm2, %vm150_vm5 }
  0x24   : > { %v152_v41 = vsel %vm151_vm6, %v143_v37, %v139_v39  ;;  %v153_v42 = vsel %vm151_vm6, %v145_v38, %v140_v40 }
  0x25   : > { %v155_v43 = vrot.slane %v152_v41, 2  ;;  %v156_v44 = vrot.slane %v153_v42, 2 }
  0x27   : > { %vm158_vm7 = vcmp.gt.s32.totalorder %v155_v43, %v152_v41  ;;  %vm159_vm8 = vcmp.eq.s32.totalorder %v155_v43, %v152_v41  ;;  %vm160_vm9 = vcmp.lt.s32.totalorder %v156_v44, %v153_v42 }
  0x28   : > { %vm161_vm10 = vmand %vm159_vm8, %vm160_vm9 }
  0x29   : > { %vm162_vm11 = vmor %vm158_vm7, %vm161_vm10 }
  0x2a   : > { %v163_v45 = vsel %vm162_vm11, %v155_v43, %v152_v41  ;;  %v164_v46 = vsel %vm162_vm11, %v156_v44, %v153_v42 }
  0x2b   : > { %v166_v47 = vrot.slane %v163_v45, 2  ;;  %v167_v48 = vrot.slane %v164_v46, 2 }
  0x2d   : > { %vm169_vm12 = vcmp.gt.s32.totalorder %v166_v47, %v163_v45  ;;  %vm170_vm13 = vcmp.eq.s32.totalorder %v166_v47, %v163_v45  ;;  %vm171_vm14 = vcmp.lt.s32.totalorder %v167_v48, %v164_v46 }
  0x2e   : > { %vm172_vm15 = vmand %vm170_vm13, %vm171_vm14 }
  0x2f   : > { %vm173_vm0 = vmor %vm169_vm12, %vm172_vm15 }
  0x30   : > { %v174_v49 = vsel %vm173_vm0, %v166_v47, %v163_v45  ;;  %v175_v50 = vsel %vm173_vm0, %v167_v48, %v164_v46 }
  0x31   : > { %v177_v51 = vrot.slane %v174_v49, 2  ;;  %v178_v52 = vrot.slane %v175_v50, 2 }
  0x33   : > { %vm180_vm1 = vcmp.gt.s32.totalorder %v177_v51, %v174_v49  ;;  %vm181_vm2 = vcmp.eq.s32.totalorder %v177_v51, %v174_v49  ;;  %vm182_vm3 = vcmp.lt.s32.totalorder %v178_v52, %v175_v50 }
  0x34   : > { %vm183_vm4 = vmand %vm181_vm2, %vm182_vm3 }
  0x35   : > { %vm184_vm5 = vmor %vm180_vm1, %vm183_vm4 }
  0x36   : > { %v186_v53 = vsel %vm184_vm5, %v178_v52, %v175_v50  ;;  %v185_v54 = vsel %vm184_vm5, %v177_v51, %v174_v49 }
  0x37   : > { %220 = vxpose.xlu1.b32.start [1/16] %v186_v53, 128  ;;  %188 = vxpose.xlu0.b32.start [1/16] %v185_v54, 128 }
  0x3b   : > { %221 = vxpose.xlu1.b32.cont [2/16] %v186_v53, 128  ;;  %189 = vxpose.xlu0.b32.cont [2/16] %v185_v54, 128 }
  0x3f   : > { %222 = vxpose.xlu1.b32.cont [3/16] %v186_v53, 128  ;;  %190 = vxpose.xlu0.b32.cont [3/16] %v185_v54, 128 }
  0x43   : > { %223 = vxpose.xlu1.b32.cont [4/16] %v186_v53, 128  ;;  %191 = vxpose.xlu0.b32.cont [4/16] %v185_v54, 128 }
  0x47   : > { %224 = vxpose.xlu1.b32.cont [5/16] %v186_v53, 128  ;;  %192 = vxpose.xlu0.b32.cont [5/16] %v185_v54, 128 }
  0x4b   : > { %225 = vxpose.xlu1.b32.cont [6/16] %v186_v53, 128  ;;  %193 = vxpose.xlu0.b32.cont [6/16] %v185_v54, 128 }
  0x4f   : > { %226 = vxpose.xlu1.b32.cont [7/16] %v186_v53, 128  ;;  %194 = vxpose.xlu0.b32.cont [7/16] %v185_v54, 128 }
  0x53   : > { %227 = vxpose.xlu1.b32.cont [8/16] %v186_v53, 128  ;;  %195 = vxpose.xlu0.b32.cont [8/16] %v185_v54, 128 }
  0x57   : > { %228 = vxpose.xlu1.b32.cont [9/16] %v186_v53, 128  ;;  %196 = vxpose.xlu0.b32.cont [9/16] %v185_v54, 128 }
  0x5b   : > { %229 = vxpose.xlu1.b32.cont [10/16] %v186_v53, 128  ;;  %197 = vxpose.xlu0.b32.cont [10/16] %v185_v54, 128 }
  0x5f   : > { %230 = vxpose.xlu1.b32.cont [11/16] %v186_v53, 128  ;;  %198 = vxpose.xlu0.b32.cont [11/16] %v185_v54, 128 }
  0x63   : > { %231 = vxpose.xlu1.b32.cont [12/16] %v186_v53, 128  ;;  %199 = vxpose.xlu0.b32.cont [12/16] %v185_v54, 128 }
  0x67   : > { %232 = vxpose.xlu1.b32.cont [13/16] %v186_v53, 128  ;;  %200 = vxpose.xlu0.b32.cont [13/16] %v185_v54, 128 }
  0x6b   : > { %233 = vxpose.xlu1.b32.cont [14/16] %v186_v53, 128  ;;  %201 = vxpose.xlu0.b32.cont [14/16] %v185_v54, 128 }
  0x6f   : > { %234 = vxpose.xlu1.b32.cont [15/16] %v186_v53, 128  ;;  %202 = vxpose.xlu0.b32.cont [15/16] %v185_v54, 128 }
  0x73   : > { %235 = vxpose.xlu1.b32.end [16/16] %v186_v53, 128  ;;  %203 = vxpose.xlu0.b32.end [16/16] %v185_v54, 128 }
  0xb7   : > { %v236_v55 = vpop.trf.xlu1  ;;  %v204_v56 = vpop.trf.xlu0 }
  0xbb   : > { %v237_v57 = vpop.trf.xlu1  ;;  %v205_v58 = vpop.trf.xlu0 }
  0xbc   : > { %vm256_vm6 = vcmp.lt.s32.totalorder %v237_v57, %v236_v55  ;;  %vm254_vm7 = vcmp.gt.s32.totalorder %v205_v58, %v204_v56  ;;  %vm255_vm8 = vcmp.eq.s32.totalorder %v205_v58, %v204_v56 }
  0xbd   : > { %vm257_vm9 = vmand %vm255_vm8, %vm256_vm6 }
  0xbe   : > { %vm258_vm10 = vmor %vm254_vm7, %vm257_vm9 }
  0xbf   : > { %v259_v59 = vsel %vm258_vm10, %v205_v58, %v204_v56  ;;  %v238_v60 = vpop.trf.xlu1  ;;  %v260_v61 = vsel %vm258_vm10, %v237_v57, %v236_v55  ;;  %v206_v62 = vpop.trf.xlu0 }
  0xc0   : > { %vm265_vm11 = vcmp.lt.s32.totalorder %v238_v60, %v260_v61  ;;  %vm263_vm12 = vcmp.gt.s32.totalorder %v206_v62, %v259_v59  ;;  %vm264_vm13 = vcmp.eq.s32.totalorder %v206_v62, %v259_v59 }
  0xc1   : > { %vm266_vm14 = vmand %vm264_vm13, %vm265_vm11 }
  0xc2   : > { %vm267_vm15 = vmor %vm263_vm12, %vm266_vm14 }
  0xc3   : > { %v268_v63 = vsel %vm267_vm15, %v206_v62, %v259_v59  ;;  %v239_v0 = vpop.trf.xlu1  ;;  %v269_v1 = vsel %vm267_vm15, %v238_v60, %v260_v61  ;;  %v207_v3 = vpop.trf.xlu0 }
  0xc4   : > { %vm274_vm0 = vcmp.lt.s32.totalorder %v239_v0, %v269_v1  ;;  %vm272_vm1 = vcmp.gt.s32.totalorder %v207_v3, %v268_v63  ;;  %vm273_vm2 = vcmp.eq.s32.totalorder %v207_v3, %v268_v63 }
  0xc5   : > { %vm275_vm3 = vmand %vm273_vm2, %vm274_vm0 }
  0xc6   : > { %vm276_vm4 = vmor %vm272_vm1, %vm275_vm3 }
  0xc7   : > { %v277_v4 = vsel %vm276_vm4, %v207_v3, %v268_v63  ;;  %v240_v5 = vpop.trf.xlu1  ;;  %v278_v6 = vsel %vm276_vm4, %v239_v0, %v269_v1  ;;  %v208_v7 = vpop.trf.xlu0 }
  0xc8   : > { %vm283_vm5 = vcmp.lt.s32.totalorder %v240_v5, %v278_v6  ;;  %vm281_vm6 = vcmp.gt.s32.totalorder %v208_v7, %v277_v4  ;;  %vm282_vm7 = vcmp.eq.s32.totalorder %v208_v7, %v277_v4 }
  0xc9   : > { %vm284_vm8 = vmand %vm282_vm7, %vm283_vm5 }
  0xca   : > { %vm285_vm9 = vmor %vm281_vm6, %vm284_vm8 }
  0xcb   : > { %v286_v8 = vsel %vm285_vm9, %v208_v7, %v277_v4  ;;  %v241_v10 = vpop.trf.xlu1  ;;  %v287_v11 = vsel %vm285_vm9, %v240_v5, %v278_v6  ;;  %v209_v12 = vpop.trf.xlu0 }
  0xcc   : > { %vm292_vm10 = vcmp.lt.s32.totalorder %v241_v10, %v287_v11  ;;  %vm290_vm11 = vcmp.gt.s32.totalorder %v209_v12, %v286_v8  ;;  %vm291_vm12 = vcmp.eq.s32.totalorder %v209_v12, %v286_v8 }
  0xcd   : > { %vm293_vm13 = vmand %vm291_vm12, %vm292_vm10 }
  0xce   : > { %vm294_vm14 = vmor %vm290_vm11, %vm293_vm13 }
  0xcf   : > { %v295_v13 = vsel %vm294_vm14, %v209_v12, %v286_v8  ;;  %v242_v14 = vpop.trf.xlu1  ;;  %v296_v15 = vsel %vm294_vm14, %v241_v10, %v287_v11  ;;  %v210_v16 = vpop.trf.xlu0 }
  0xd0   : > { %vm301_vm15 = vcmp.lt.s32.totalorder %v242_v14, %v296_v15  ;;  %vm299_vm0 = vcmp.gt.s32.totalorder %v210_v16, %v295_v13  ;;  %vm300_vm1 = vcmp.eq.s32.totalorder %v210_v16, %v295_v13 }
  0xd1   : > { %vm302_vm2 = vmand %vm300_vm1, %vm301_vm15 }
  0xd2   : > { %vm303_vm3 = vmor %vm299_vm0, %vm302_vm2 }
  0xd3   : > { %v304_v17 = vsel %vm303_vm3, %v210_v16, %v295_v13  ;;  %v243_v18 = vpop.trf.xlu1  ;;  %v305_v19 = vsel %vm303_vm3, %v242_v14, %v296_v15  ;;  %v211_v20 = vpop.trf.xlu0 }
  0xd4   : > { %vm310_vm4 = vcmp.lt.s32.totalorder %v243_v18, %v305_v19  ;;  %vm308_vm5 = vcmp.gt.s32.totalorder %v211_v20, %v304_v17  ;;  %vm309_vm6 = vcmp.eq.s32.totalorder %v211_v20, %v304_v17 }
  0xd5   : > { %vm311_vm7 = vmand %vm309_vm6, %vm310_vm4 }
  0xd6   : > { %vm312_vm8 = vmor %vm308_vm5, %vm311_vm7 }
  0xd7   : > { %v313_v21 = vsel %vm312_vm8, %v211_v20, %v304_v17  ;;  %v244_v22 = vpop.trf.xlu1  ;;  %v314_v23 = vsel %vm312_vm8, %v243_v18, %v305_v19  ;;  %v212_v24 = vpop.trf.xlu0 }
  0xd8   : > { %vm319_vm9 = vcmp.lt.s32.totalorder %v244_v22, %v314_v23  ;;  %vm317_vm10 = vcmp.gt.s32.totalorder %v212_v24, %v313_v21  ;;  %vm318_vm11 = vcmp.eq.s32.totalorder %v212_v24, %v313_v21 }
  0xd9   : > { %vm320_vm12 = vmand %vm318_vm11, %vm319_vm9 }
  0xda   : > { %vm321_vm13 = vmor %vm317_vm10, %vm320_vm12 }
  0xdb   : > { %v322_v25 = vsel %vm321_vm13, %v212_v24, %v313_v21  ;;  %v245_v26 = vpop.trf.xlu1  ;;  %v323_v27 = vsel %vm321_vm13, %v244_v22, %v314_v23  ;;  %v213_v28 = vpop.trf.xlu0  ;;  %v1131_v24 = vmov 2147483648  }
  0xdc   : > { %vm328_vm14 = vcmp.lt.s32.totalorder %v245_v26, %v323_v27  ;;  %vm326_vm15 = vcmp.gt.s32.totalorder %v213_v28, %v322_v25  ;;  %vm327_vm0 = vcmp.eq.s32.totalorder %v213_v28, %v322_v25 }
  0xdd   : > { %vm329_vm1 = vmand %vm327_vm0, %vm328_vm14 }
  0xde   : > { %vm330_vm2 = vmor %vm326_vm15, %vm329_vm1 }
  0xdf   : > { %v331_v29 = vsel %vm330_vm2, %v213_v28, %v322_v25  ;;  %v246_v30 = vpop.trf.xlu1  ;;  %v332_v31 = vsel %vm330_vm2, %v245_v26, %v323_v27  ;;  %v214_v32 = vpop.trf.xlu0  ;;  %v1132_v25 = vmov 2147483647  }
  0xe0   : > { %vm337_vm3 = vcmp.lt.s32.totalorder %v246_v30, %v332_v31  ;;  %vm335_vm4 = vcmp.gt.s32.totalorder %v214_v32, %v331_v29  ;;  %vm336_vm5 = vcmp.eq.s32.totalorder %v214_v32, %v331_v29 }
  0xe1   : > { %vm338_vm6 = vmand %vm336_vm5, %vm337_vm3 }
  0xe2   : > { %vm339_vm7 = vmor %vm335_vm4, %vm338_vm6 }
  0xe3   : > { %v340_v33 = vsel %vm339_vm7, %v214_v32, %v331_v29  ;;  %v247_v34 = vpop.trf.xlu1  ;;  %v341_v35 = vsel %vm339_vm7, %v246_v30, %v332_v31  ;;  %v215_v36 = vpop.trf.xlu0  ;;  %v563_v30 = vld [vmem:[#allocation13] sm:$0xff] (%p109_p2)  ;;  %v564_v31 = vld [vmem:[#allocation15] sm:$0xff] (%p109_p2)  ;;  %v1133_v32 = vmov (%p109_p2), 839939668  }
  0xe4   : > { %vm346_vm8 = vcmp.lt.s32.totalorder %v247_v34, %v341_v35  ;;  %vm344_vm9 = vcmp.gt.s32.totalorder %v215_v36, %v340_v33  ;;  %vm345_vm10 = vcmp.eq.s32.totalorder %v215_v36, %v340_v33 }
  0xe5   : > { %vm347_vm11 = vmand %vm345_vm10, %vm346_vm8 }
  0xe6   : > { %vm348_vm12 = vmor %vm344_vm9, %vm347_vm11 }
  0xe7   : > { %v349_v37 = vsel %vm348_vm12, %v215_v36, %v340_v33  ;;  %v248_v38 = vpop.trf.xlu1  ;;  %v350_v39 = vsel %vm348_vm12, %v247_v34, %v341_v35  ;;  %v216_v40 = vpop.trf.xlu0  ;;  %v588_v33 = vunpack.c.l.s4 (%p109_p2), %v1133_v32  ;;  %v1134_v34 = vmov (%p109_p2), 1417023538  }
  0xe8   : > { %vm355_vm13 = vcmp.lt.s32.totalorder %v248_v38, %v350_v39  ;;  %vm353_vm14 = vcmp.gt.s32.totalorder %v216_v40, %v349_v37  ;;  %vm354_vm15 = vcmp.eq.s32.totalorder %v216_v40, %v349_v37  ;;  %v616_v35 = vunpack.c.l.s4 (%p109_p2), %v1134_v34 }
  0xe9   : > { %vm356_vm0 = vmand %vm354_vm15, %vm355_vm13  ;;  %v589_v36 = vunpack.c.0.s8 (%p109_p2), %v588_v33 }
  0xea   : > { %vm357_vm1 = vmor %vm353_vm14, %vm356_vm0 }
  0xeb   : > { %v358_v41 = vsel %vm357_vm1, %v216_v40, %v349_v37  ;;  %v249_v42 = vpop.trf.xlu1  ;;  %v359_v43 = vsel %vm357_vm1, %v248_v38, %v350_v39  ;;  %v217_v44 = vpop.trf.xlu0  ;;  %v609_v40 = vand.u32 (%p109_p2), 4, %v1166_v9 }
  0xec   : > { %vm364_vm2 = vcmp.lt.s32.totalorder %v249_v42, %v359_v43  ;;  %vm362_vm3 = vcmp.gt.s32.totalorder %v217_v44, %v358_v41  ;;  %vm363_vm4 = vcmp.eq.s32.totalorder %v217_v44, %v358_v41 }
  0xed   : > { %vm365_vm5 = vmand %vm363_vm4, %vm364_vm2 }
  0xee   : > { %vm366_vm6 = vmor %vm362_vm3, %vm365_vm5 }
  0xef   : > { %v367_v45 = vsel %vm366_vm6, %v217_v44, %v358_v41  ;;  %v250_v46 = vpop.trf.xlu1  ;;  %v368_v47 = vsel %vm366_vm6, %v249_v42, %v359_v43  ;;  %v218_v48 = vpop.trf.xlu0  ;;  %v617_v42 = vunpack.c.0.s8 (%p109_p2), %v616_v35 }
  0xf0   : > { %vm373_vm7 = vcmp.lt.s32.totalorder %v250_v46, %v368_v47  ;;  %vm371_vm8 = vcmp.gt.s32.totalorder %v218_v48, %v367_v45  ;;  %vm372_vm9 = vcmp.eq.s32.totalorder %v218_v48, %v367_v45 }
  0xf1   : > { %vm374_vm10 = vmand %vm372_vm9, %vm373_vm7 }
  0xf2   : > { %vm375_vm11 = vmor %vm371_vm8, %vm374_vm10 }
  0xf3   : > { %v376_v49 = vsel %vm375_vm11, %v218_v48, %v367_v45  ;;  %v251_v50 = vpop.trf.xlu1  ;;  %v377_v51 = vsel %vm375_vm11, %v250_v46, %v368_v47  ;;  %v219_v52 = vpop.trf.xlu0  ;;  %v1135_v48 = vmov (%p109_p2), 1732584193  }
  0xf4   : > { %vm382_vm12 = vcmp.lt.s32.totalorder %v251_v50, %v377_v51  ;;  %vm380_vm13 = vcmp.gt.s32.totalorder %v219_v52, %v376_v49  ;;  %vm381_vm14 = vcmp.eq.s32.totalorder %v219_v52, %v376_v49 }
  0xf5   : > { %vm383_vm15 = vmand %vm381_vm14, %vm382_vm12 }
  0xf6   : > { %vm384_vm0 = vmor %vm380_vm13, %vm383_vm15 }
  0xf7   : > { %v385_v53 = vsel %vm384_vm0, %v219_v52, %v376_v49  ;;  %v386_v54 = vsel %vm384_vm0, %v251_v50, %v377_v51  ;;  %v644_v49 = vunpack.c.l.s4 (%p109_p2), %v1135_v48  ;;  %v1195_v50 = vsub.s32 (%p109_p2), %v617_v42, %v1166_v9 }
  0xf8   : > { %v388_v55 = vrot.slane %v385_v53, 1  ;;  %v389_v56 = vrot.slane %v386_v54, 1  ;;  %v637_v51 = vand.u32 (%p109_p2), 2, %v1166_v9 }
  0xfa   : > { %vm391_vm1 = vcmp.gt.s32.totalorder %v388_v55, %v385_v53  ;;  %vm392_vm2 = vcmp.eq.s32.totalorder %v388_v55, %v385_v53  ;;  %vm393_vm3 = vcmp.lt.s32.totalorder %v389_v56, %v386_v54 }
  0xfb   : > { %vm394_vm4 = vmand %vm392_vm2, %vm393_vm3 }
  0xfc   : > { %vm395_vm5 = vmor %vm391_vm1, %vm394_vm4 }
  0xfd   : > { %v396_v57 = vsel %vm395_vm5, %v388_v55, %v385_v53  ;;  %v397_v58 = vsel %vm395_vm5, %v389_v56, %v386_v54  ;;  %v645_v54 = vunpack.c.0.s8 (%p109_p2), %v644_v49 }
  0xfe   : > { %v399_v59 = vrot.slane %v396_v57, 1  ;;  %v400_v60 = vrot.slane %v397_v58, 1 }
 0x100   : > { %vm402_vm6 = vcmp.gt.s32.totalorder %v399_v59, %v396_v57  ;;  %vm403_vm7 = vcmp.eq.s32.totalorder %v399_v59, %v396_v57  ;;  %vm404_vm8 = vcmp.lt.s32.totalorder %v400_v60, %v397_v58 }
 0x101   : > { %vm405_vm9 = vmand %vm403_vm7, %vm404_vm8 }
 0x102   : > { %vm406_vm10 = vmor %vm402_vm6, %vm405_vm9 }
 0x103   : > { %v407_v61 = vsel %vm406_vm10, %v399_v59, %v396_v57  ;;  %v408_v62 = vsel %vm406_vm10, %v400_v60, %v397_v58  ;;  %v1209_v59 = vsub.s32 (%p109_p2), %v645_v54, %v1166_v9 }
 0x104   : > { %v410_v63 = vrot.slane %v407_v61, 1  ;;  %v411_v0 = vrot.slane %v408_v62, 1 }
 0x106   : > { %vm415_vm11 = vcmp.lt.s32.totalorder %v411_v0, %v408_v62  ;;  %vm413_vm12 = vcmp.gt.s32.totalorder %v410_v63, %v407_v61  ;;  %vm414_vm13 = vcmp.eq.s32.totalorder %v410_v63, %v407_v61 }
 0x107   : > { %vm416_vm14 = vmand %vm414_vm13, %vm415_vm11 }
 0x108   : > { %vm417_vm15 = vmor %vm413_vm12, %vm416_vm14 }
 0x109   : > { %v418_v1 = vsel %vm417_vm15, %v410_v63, %v407_v61  ;;  %v419_v3 = vsel %vm417_vm15, %v411_v0, %v408_v62  ;;  %v665_v63 = vand.u32 (%p109_p2), 1, %v1166_v9 }
 0x10a   : > { %v421_v4 = vrot.slane %v418_v1, 1  ;;  %v422_v5 = vrot.slane %v419_v3, 1 }
 0x10c   : > { %vm424_vm0 = vcmp.gt.s32.totalorder %v421_v4, %v418_v1  ;;  %vm425_vm1 = vcmp.eq.s32.totalorder %v421_v4, %v418_v1  ;;  %vm426_vm2 = vcmp.lt.s32.totalorder %v422_v5, %v419_v3 }
 0x10d   : > { %vm427_vm3 = vmand %vm425_vm1, %vm426_vm2 }
 0x10e   : > { %vm428_vm4 = vmor %vm424_vm0, %vm427_vm3 }
 0x10f   : > { %v429_v6 = vsel %vm428_vm4, %v421_v4, %v418_v1  ;;  %v430_v7 = vsel %vm428_vm4, %v422_v5, %v419_v3 }
 0x110   : > { %v432_v8 = vrot.slane %v429_v6, 1  ;;  %v433_v10 = vrot.slane %v430_v7, 1 }
 0x112   : > { %vm435_vm5 = vcmp.gt.s32.totalorder %v432_v8, %v429_v6  ;;  %vm436_vm6 = vcmp.eq.s32.totalorder %v432_v8, %v429_v6  ;;  %vm437_vm7 = vcmp.lt.s32.totalorder %v433_v10, %v430_v7 }
 0x113   : > { %vm438_vm8 = vmand %vm436_vm6, %vm437_vm7 }
 0x114   : > { %vm439_vm9 = vmor %vm435_vm5, %vm438_vm8 }
 0x115   : > { %v440_v11 = vsel %vm439_vm9, %v432_v8, %v429_v6  ;;  %v441_v12 = vsel %vm439_vm9, %v433_v10, %v430_v7 }
 0x116   : > { %v443_v13 = vrot.slane %v440_v11, 1  ;;  %v444_v14 = vrot.slane %v441_v12, 1 }
 0x118   : > { %vm446_vm10 = vcmp.gt.s32.totalorder %v443_v13, %v440_v11  ;;  %vm447_vm11 = vcmp.eq.s32.totalorder %v443_v13, %v440_v11  ;;  %vm448_vm12 = vcmp.lt.s32.totalorder %v444_v14, %v441_v12 }
 0x119   : > { %vm449_vm13 = vmand %vm447_vm11, %vm448_vm12  ;;  %vm1189_vm11 = vcmp.ne.s32.totalorder (%p109_p2), %v609_v40, 0 }
 0x11a   : > { %vm450_vm14 = vmor %vm446_vm10, %vm449_vm13 }
 0x11b   : > { %v451_v15 = vsel %vm450_vm14, %v443_v13, %v440_v11  ;;  %v452_v16 = vsel %vm450_vm14, %v444_v14, %v441_v12 }
 0x11c   : > { %v454_v17 = vrot.slane %v451_v15, 1  ;;  %v455_v18 = vrot.slane %v452_v16, 1 }
 0x11e   : > { %vm457_vm15 = vcmp.gt.s32.totalorder %v454_v17, %v451_v15  ;;  %vm458_vm0 = vcmp.eq.s32.totalorder %v454_v17, %v451_v15  ;;  %vm459_vm1 = vcmp.lt.s32.totalorder %v455_v18, %v452_v16 }
 0x11f   : > { %vm460_vm2 = vmand %vm458_vm0, %vm459_vm1 }
 0x120   : > { %vm461_vm3 = vmor %vm457_vm15, %vm460_vm2 }
 0x121   : > { %v463_v19 = vsel %vm461_vm3, %v455_v18, %v452_v16  ;;  %v462_v20 = vsel %vm461_vm3, %v454_v17, %v451_v15 }
 0x122   : > { %470 = vxpose.xlu0.b32.start.end [1/1] (short) (narrow) %v463_v19, 8  ;;  %466 = vst [vmem:[%s465_s17] sm:$0x1] %v462_v20  ;;  %468 = vst [vmem:[%s467_s18] sm:$0x1] %v463_v19  ;;  %s1004_s17 = sshll.u32 (%p109_p2), %s1136_s0, 4  ;;  %s1137_s18 = smov (%p109_p2), [#allocation11]   ;;  %s1005_s17 = int_to_ptr.vmem [resolvable:$true] %s1004_s17 }
 0x123   :  { %p1076_p4 = scmp.lt.s32.totalorder (%p109_p2), %s1005_s17, %s1005_s17 }
 0x129   :  { %v551_v28 = vld [vmem:[#allocation14 + $0x7] ss:$-1 sm:$0xff] (%p109_p2)  ;;  %v557_v29 = vld [vmem:[#allocation16 + $0x7] ss:$-1 sm:$0xff] (%p109_p2) }
 0x12a   :  { %vm569_vm6 = vcmp.gt.s32.totalorder (%p109_p2), %v563_v30, %v551_v28  ;;  %vm570_vm7 = vcmp.eq.s32.totalorder (%p109_p2), %v563_v30, %v551_v28  ;;  %vm571_vm8 = vcmp.lt.s32.totalorder (%p109_p2), %v564_v31, %v557_v29 }
 0x12b   :  { %vm572_vm9 = vmand (%p109_p2), %vm570_vm7, %vm571_vm8  ;;  %vm1202_vm7 = vcmp.ne.s32.totalorder (%p109_p2), %v637_v51, 0 }
 0x12c   :  { %vm573_vm10 = vmor (%p109_p2), %vm569_vm6, %vm572_vm9 }
 0x12d   :  { %v574_v37 = vsel (%p109_p2), %vm573_vm10, %v563_v30, %v551_v28  ;;  %v576_v38 = vsel (%p109_p2), %vm573_vm10, %v551_v28, %v563_v30  ;;  %v578_v39 = vsel (%p109_p2), %vm573_vm10, %v564_v31, %v557_v29  ;;  %v580_v41 = vsel (%p109_p2), %vm573_vm10, %v557_v29, %v564_v31 }
 0x1a2   : > { %v486_v21 = vpop.trf.xlu0 }
 0x1a3   : > { %v525_v22 = vrot.slane %v486_v21, 1  ;;  %1047 = vpush %v486_v21 }
 0x1a5   : > { %1049 = vpush %v525_v22 }
 0x1d4   : > { %s1048_s19 = spop %1047 }
 0x1d5   : > { %s503_s20 = sshrl.u32 %s1048_s19, 9  ;;  %s505_s21 = ssub.s32 0, %s1048_s19 }
 0x1d6   : > { %p504_p0 = scmp.lt.s32.totalorder %s1048_s19, 0  ;;  %s1039_s22 = smin.u32 %s1048_s19, %s505_s21 }
 0x1d7   : > { %s507_s23 = sand.u32 511, %s1039_s22   ;;  %s1041_s24 = sshll.u32 %s503_s20, 3 }
 0x1d8   : > { %s508_s25 = ssub.s32 0, %s507_s23  ;;  %s1050_s26 = spop %1049 }
 0x1d9   : > { %s1288_s25 = smov (!%p504_p0, %s508_s25), %s507_s23  ;;  %s529_s30 = ssub.s32 0, %s1050_s26 }
 0x1da   : > { %s510_s27 = sshrl.u32 %s1288_s25, 7  ;;  %s512_s28 = sand.u32 127, %s1288_s25  }
 0x1db   : > { %s1040_s29 = sshll.u32 %s510_s27, 8  ;;  %s1043_s4 = smin.u32 %s1050_s26, %s529_s30 }
 0x1dc   : > { %s513_s3 = sadd.s32 %s1040_s29, %s512_s28  ;;  %p528_p1 = scmp.lt.s32.totalorder %s1050_s26, 0 }
 0x1dd   : > { %v515_v23 = vstv %s513_s3  ;;  %s531_s5 = sand.u32 511, %s1043_s4   ;;  %s519_s7 = scalar_lea.vmem [#allocation17], %s1041_s24 }
 0x1de   : > { %vm517_vm4 = vcmp.eq.s32.totalorder %v39_v2, %v515_v23  ;;  %s532_s6 = ssub.s32 0, %s531_s5  ;;  %s522_s8 = scalar_lea.vmem [#allocation18], %s1041_s24 }
 0x1df   : > { %520 = vst.msk [vmem:[%s519_s7] sm:$0xff] %vm517_vm4, %v1131_v24  ;;  %523 = vst.msk [vmem:[%s522_s8] sm:$0xff] %vm517_vm4, %v1132_v25  ;;  %s1290_s6 = smov (!%p528_p1, %s532_s6), %s531_s5  ;;  %s527_s9 = sshrl.u32 %s1050_s26, 9 }
 0x1e0   : > { %s534_s10 = sshrl.u32 %s1290_s6, 7  ;;  %s536_s11 = sand.u32 127, %s1290_s6  }
 0x1e1   : > { %s1044_s12 = sshll.u32 %s534_s10, 8  ;;  %s1045_s14 = sshll.u32 %s527_s9, 3 }
 0x1e2   : > { %s537_s13 = sadd.s32 %s1044_s12, %s536_s11  ;;  %s543_s15 = scalar_lea.vmem [#allocation17], %s1045_s14 }
 0x1e3   : > { %v539_v26 = vstv %s537_s13  ;;  %s546_s16 = scalar_lea.vmem [#allocation18], %s1045_s14  ;;  %111 = sbr.rel (!%p109_p2) target bundleno = 19 (0x13), region = 72 }
 0x1e4   : > { %v540_v27 = vadd.s32 128, %v539_v26  ;;  %s1012_s19 = sshll.u32 (%p109_p2), %s1137_s18, 4  ;;  %s1071_s20 = scalar_lea.vmem (%p109_p2), %s1005_s17, 32  ;;  %s1013_s19 = int_to_ptr.vmem [resolvable:$true] %s1012_s19 }
 0x1e5   :  { %p1072_p3 = scmp.ne.s32.totalorder (%p109_p2), %s1005_s17, %s1071_s20  ;;  %p1077_p5 = scmp.lt.s32.totalorder (%p109_p2), %s1071_s20, %s1071_s20 }
 0x1e6   : > { %vm541_vm5 = vcmp.eq.s32.totalorder %v39_v2, %v540_v27  ;;  %v1184_v2 = vsub.s32 (%p109_p2), %v589_v36, %v1166_v9 }
 0x1e7   : > { %544 = vst.msk [vmem:[%s543_s15] sm:$0xff] %vm541_vm5, %v1131_v24  ;;  %547 = vst.msk [vmem:[%s546_s16] sm:$0xff] %vm541_vm5, %v1132_v25  ;;  %p1078_p6 = por (%p109_p2), %p1077_p5, %p1076_p4 }
 0x1e8   :  { %v593_v43 = vrot.slane (%p109_p2), %v574_v37, %v1184_v2  ;;  %v600_v44 = vrot.slane (%p109_p2), %v578_v39, %v1184_v2  ;;  %v774_v45 = vrot.slane (%p109_p2), %v576_v38, %v1184_v2  ;;  %v781_v47 = vrot.slane (%p109_p2), %v580_v41, %v1184_v2 }
 0x1e9   :  { %p1079_p7 = pnand (%p109_p2), %p1078_p6, %p1072_p3 }
 0x1ea   :  { %vm602_vm12 = vcmp.gt.s32.totalorder %v574_v37, %v593_v43  ;;  %vm603_vm13 = vcmp.eq.s32.totalorder %v574_v37, %v593_v43  ;;  %vm604_vm14 = vcmp.lt.s32.totalorder %v578_v39, %v600_v44  ;;  %vm784_vm0 = vcmp.eq.s32.totalorder %v576_v38, %v774_v45 }
 0x1eb   :  { %vm605_vm15 = vmand %vm603_vm13, %vm604_vm14  ;;  %vm785_vm1 = vcmp.lt.s32.totalorder %v580_v41, %v781_v47  ;;  %vm783_vm3 = vcmp.gt.s32.totalorder %v576_v38, %v774_v45 }
 0x1ec   :  { %vm606_vm2 = vmor %vm602_vm12, %vm605_vm15 }
 0x1ed   :  { %vm611_vm4 = vmxor %vm606_vm2, %vm1189_vm11 }
 0x1ee   :  { %v612_v52 = vsel %vm611_vm4, %v574_v37, %v593_v43  ;;  %v613_v53 = vsel %vm611_vm4, %v578_v39, %v600_v44  ;;  %vm786_vm5 = vmand %vm784_vm0, %vm785_vm1 }
 0x1ef   :  { %v621_v55 = vrot.slane %v612_v52, %v1195_v50  ;;  %v628_v56 = vrot.slane %v613_v53, %v1195_v50  ;;  %vm787_vm6 = vmor %vm783_vm3, %vm786_vm5 }
 0x1f0   :  { %vm792_vm8 = vmxor %vm787_vm6, %vm1189_vm11 }
 0x1f1   :  { %vm630_vm9 = vcmp.gt.s32.totalorder %v612_v52, %v621_v55  ;;  %vm631_vm10 = vcmp.eq.s32.totalorder %v612_v52, %v621_v55  ;;  %vm632_vm12 = vcmp.lt.s32.totalorder %v613_v53, %v628_v56  ;;  %v793_v58 = vsel %vm792_vm8, %v576_v38, %v774_v45 }
 0x1f2   :  { %vm633_vm13 = vmand %vm631_vm10, %vm632_vm12  ;;  %v794_v60 = vsel %vm792_vm8, %v580_v41, %v781_v47  ;;  %v802_v61 = vrot.slane %v793_v58, %v1195_v50 }
 0x1f3   :  { %vm634_vm14 = vmor %vm630_vm9, %vm633_vm13  ;;  %v809_v62 = vrot.slane %v794_v60, %v1195_v50  ;;  %vm1218_vm9 = vcmp.ne.s32.totalorder %v665_v63, 0 }
 0x1f4   :  { %vm639_vm15 = vmxor %vm634_vm14, %vm1202_vm7  ;;  %vm811_vm0 = vcmp.gt.s32.totalorder %v793_v58, %v802_v61  ;;  %vm812_vm1 = vcmp.eq.s32.totalorder %v793_v58, %v802_v61 }
 0x1f5   :  { %v640_v0 = vsel %vm639_vm15, %v612_v52, %v621_v55  ;;  %v641_v1 = vsel %vm639_vm15, %v613_v53, %v628_v56  ;;  %vm813_vm2 = vcmp.lt.s32.totalorder %v794_v60, %v809_v62 }
 0x1f6   :  { %v649_v3 = vrot.slane %v640_v0, %v1209_v59  ;;  %v656_v4 = vrot.slane %v641_v1, %v1209_v59  ;;  %vm814_vm3 = vmand %vm812_vm1, %vm813_vm2 }
 0x1f7   :  { %vm815_vm4 = vmor %vm811_vm0, %vm814_vm3 }
 0x1f8   :  { %vm658_vm5 = vcmp.gt.s32.totalorder %v640_v0, %v649_v3  ;;  %vm659_vm6 = vcmp.eq.s32.totalorder %v640_v0, %v649_v3  ;;  %vm660_vm8 = vcmp.lt.s32.totalorder %v641_v1, %v656_v4  ;;  %vm820_vm10 = vmxor %vm815_vm4, %vm1202_vm7 }
 0x1f9   :  { %vm661_vm12 = vmand %vm659_vm6, %vm660_vm8  ;;  %v821_v9 = vsel %vm820_vm10, %v793_v58, %v802_v61  ;;  %v822_v6 = vsel %vm820_vm10, %v794_v60, %v809_v62 }
 0x1fa   :  { %vm662_vm13 = vmor %vm658_vm5, %vm661_vm12  ;;  %v830_v7 = vrot.slane %v821_v9, %v1209_v59  ;;  %v837_v8 = vrot.slane %v822_v6, %v1209_v59 }
 0x1fb   :  { %vm667_vm14 = vmxor %vm662_vm13, %vm1218_vm9 }
 0x1fc   :  { %v668_v10 = vsel %vm667_vm14, %v640_v0, %v649_v3  ;;  %v669_v11 = vsel %vm667_vm14, %v641_v1, %v656_v4  ;;  %vm839_vm15 = vcmp.gt.s32.totalorder %v821_v9, %v830_v7  ;;  %vm840_vm0 = vcmp.eq.s32.totalorder %v821_v9, %v830_v7 }
 0x1fd   :  { %v683_v12 = vrot.slane %v668_v10, %v1184_v2  ;;  %v690_v13 = vrot.slane %v669_v11, %v1184_v2  ;;  %vm841_vm1 = vcmp.lt.s32.totalorder %v822_v6, %v837_v8 }
 0x1fe   :  { %vm842_vm2 = vmand %vm840_vm0, %vm841_vm1 }
 0x1ff   :  { %vm692_vm3 = vcmp.gt.s32.totalorder %v668_v10, %v683_v12  ;;  %vm693_vm4 = vcmp.eq.s32.totalorder %v668_v10, %v683_v12  ;;  %vm694_vm5 = vcmp.lt.s32.totalorder %v669_v11, %v690_v13  ;;  %vm843_vm6 = vmor %vm839_vm15, %vm842_vm2 }
 0x200   :  { %vm695_vm8 = vmand %vm693_vm4, %vm694_vm5 }
 0x201   :  { %vm696_vm10 = vmor %vm692_vm3, %vm695_vm8 }
 0x202   :  { %vm701_vm12 = vmxor %vm696_vm10, %vm1189_vm11 }
 0x203   :  { %v702_v14 = vsel %vm701_vm12, %v668_v10, %v683_v12  ;;  %v703_v15 = vsel %vm701_vm12, %v669_v11, %v690_v13  ;;  %vm848_vm13 = vmxor %vm843_vm6, %vm1218_vm9 }
 0x204   :  { %v711_v16 = vrot.slane %v702_v14, %v1195_v50  ;;  %v718_v17 = vrot.slane %v703_v15, %v1195_v50  ;;  %v849_v18 = vsel %vm848_vm13, %v821_v9, %v830_v7  ;;  %v850_v19 = vsel %vm848_vm13, %v822_v6, %v837_v8 }
 0x205   :  { %v864_v20 = vrot.slane %v849_v18, %v1184_v2  ;;  %v871_v21 = vrot.slane %v850_v19, %v1184_v2 }
 0x206   :  { %vm720_vm14 = vcmp.gt.s32.totalorder %v702_v14, %v711_v16  ;;  %vm721_vm15 = vcmp.eq.s32.totalorder %v702_v14, %v711_v16  ;;  %vm722_vm0 = vcmp.lt.s32.totalorder %v703_v15, %v718_v17 }
 0x207   :  { %vm723_vm1 = vmand %vm721_vm15, %vm722_vm0  ;;  %vm874_vm2 = vcmp.eq.s32.totalorder %v849_v18, %v864_v20  ;;  %vm875_vm3 = vcmp.lt.s32.totalorder %v850_v19, %v871_v21  ;;  %vm873_vm5 = vcmp.gt.s32.totalorder %v849_v18, %v864_v20 }
 0x208   :  { %vm724_vm4 = vmor %vm720_vm14, %vm723_vm1 }
 0x209   :  { %vm729_vm6 = vmxor %vm724_vm4, %vm1202_vm7 }
 0x20a   :  { %v730_v22 = vsel %vm729_vm6, %v702_v14, %v711_v16  ;;  %v731_v23 = vsel %vm729_vm6, %v703_v15, %v718_v17  ;;  %vm876_vm8 = vmand %vm874_vm2, %vm875_vm3 }
 0x20b   :  { %v739_v24 = vrot.slane %v730_v22, %v1209_v59  ;;  %v746_v25 = vrot.slane %v731_v23, %v1209_v59  ;;  %vm877_vm10 = vmor %vm873_vm5, %vm876_vm8 }
 0x20c   :  { %vm882_vm12 = vmxor %vm877_vm10, %vm1189_vm11 }
 0x20d   :  { %vm748_vm13 = vcmp.gt.s32.totalorder %v730_v22, %v739_v24  ;;  %vm749_vm15 = vcmp.eq.s32.totalorder %v730_v22, %v739_v24  ;;  %vm750_vm0 = vcmp.lt.s32.totalorder %v731_v23, %v746_v25  ;;  %v883_v26 = vsel %vm882_vm12, %v849_v18, %v864_v20 }
 0x20e   :  { %vm751_vm14 = vmand %vm749_vm15, %vm750_vm0  ;;  %v884_v27 = vsel %vm882_vm12, %v850_v19, %v871_v21  ;;  %v892_v28 = vrot.slane %v883_v26, %v1195_v50 }
 0x20f   :  { %vm752_vm1 = vmor %vm748_vm13, %vm751_vm14  ;;  %v899_v29 = vrot.slane %v884_v27, %v1195_v50 }
 0x210   :  { %vm757_vm2 = vmxor %vm752_vm1, %vm1218_vm9  ;;  %vm901_vm3 = vcmp.gt.s32.totalorder %v883_v26, %v892_v28  ;;  %vm902_vm4 = vcmp.eq.s32.totalorder %v883_v26, %v892_v28 }
 0x211   :  { %v758_v30 = vsel %vm757_vm2, %v730_v22, %v739_v24  ;;  %v759_v31 = vsel %vm757_vm2, %v731_v23, %v746_v25  ;;  %vm903_vm5 = vcmp.lt.s32.totalorder %v884_v27, %v899_v29 }
 0x212   :  { %761 = vst [vmem:[#allocation13] sm:$0xff] %v758_v30  ;;  %762 = vst [vmem:[#allocation15] sm:$0xff] %v759_v31 }
 0x213   :  { %vm904_vm11 = vmand %vm902_vm4, %vm903_vm5 }
 0x214   :  { %vm905_vm6 = vmor %vm901_vm3, %vm904_vm11 }
 0x215   :  { %vm910_vm8 = vmxor %vm905_vm6, %vm1202_vm7 }
 0x216   :  { %v911_v32 = vsel %vm910_vm8, %v883_v26, %v892_v28  ;;  %v912_v33 = vsel %vm910_vm8, %v884_v27, %v899_v29 }
 0x217   :  { %v920_v34 = vrot.slane %v911_v32, %v1209_v59  ;;  %v927_v35 = vrot.slane %v912_v33, %v1209_v59 }
 0x219   :  { %vm929_vm10 = vcmp.gt.s32.totalorder %v911_v32, %v920_v34  ;;  %vm930_vm12 = vcmp.eq.s32.totalorder %v911_v32, %v920_v34  ;;  %vm931_vm13 = vcmp.lt.s32.totalorder %v912_v33, %v927_v35  ;;  %v945_v38 = vld [vmem:[#allocation13] sm:$0xff]  ;;  %v969_v41 = vld [vmem:[#allocation15] sm:$0xff] }
 0x21a   :  { %vm932_vm15 = vmand %vm930_vm12, %vm931_vm13  ;;  %vm946_vm7 = vcmp.lt.s32.totalorder %v945_v38, 0  ;;  %v947_v39 = vsub.s32 2147483647, %v945_v38 }
 0x21b   :  { %vm933_vm0 = vmor %vm929_vm10, %vm932_vm15 }
 0x21c   :  { %vm938_vm14 = vmxor %vm933_vm0, %vm1218_vm9  ;;  %v948_v40 = vsel %vm946_vm7, %v947_v39, %v945_v38 }
 0x21d   :  { %v939_v36 = vsel %vm938_vm14, %v911_v32, %v920_v34  ;;  %v940_v37 = vsel %vm938_vm14, %v912_v33, %v927_v35  ;;  %949 = vst [vmem:[#allocation13] sm:$0xff] %v948_v40  ;;  %951 = vxpose.xlu0.b32.start.end [1/1] (short) (narrow) %v948_v40, 8 }
 0x21e   :  { %942 = vst [vmem:[#allocation14] sm:$0xff] %v939_v36  ;;  %943 = vst [vmem:[#allocation16] sm:$0xff] %v940_v37 }
 0x221   :  { %970 = vxpose.xlu0.b32.start.end [1/1] (short) (narrow) %v969_v41, 8 }
 0x29d   :  { %v952_v2 = vpop.trf.xlu0 }
 0x29e   :  { %968 = vst [vmem:[#allocation7] sm:$0xff] %v952_v2 }
 0x2a1   :  { %v971_v42 = vpop.trf.xlu0 }
 0x2a2   :  { %987 = vst [vmem:[#allocation10] sm:$0xff] %v971_v42 }
 0x2a5   :  { %v991_v43 = vld [vmem:[#allocation7] sm:$0x3] }
 0x2a6   :  { %993 = vst [vmem:[#allocation8] sm:$0x3] %v991_v43 }
 0x2a7   :  { %1082 = shalt.err (!%p1079_p7)
}
 0x2a8   :  { %s1083_s23 = scalar_lea.hbm %s1279_s1, 32 }
 0x2a9   :  { %p1084_p8 = scmp.ne.s32.totalorder %s1279_s1, %s1083_s23  ;;  %p1087_p9 = scmp.lt.u32.totalorder %s1083_s23, %s1279_s1 }
 0x2ab   :  { %p1089_p10 = pnand %p1087_p9, %p1084_p8 }
 0x2ad   :  { %1092 = shalt.err (!%p1089_p10)
}
 0x2ae   :  { %1007 = dma.vmem_to_hbm [thread:$0]  %s1005_s17, 32, %s1279_s1, [#allocation9]   ;;  %v997_v44 = vld [vmem:[#allocation10] sm:$0x3] }
 0x2af   :  { %999 = vst [vmem:[#allocation11] sm:$0x3] %v997_v44  ;;  %s1093_s30 = scalar_lea.vmem %s1013_s19, 32  ;;  %p1098_p12 = scmp.lt.s32.totalorder %s1013_s19, %s1013_s19 }
 0x2b0   :  { %p1094_p11 = scmp.ne.s32.totalorder %s1013_s19, %s1093_s30  ;;  %p1099_p13 = scmp.lt.s32.totalorder %s1093_s30, %s1093_s30 }
 0x2b2   :  { %p1100_p0 = por %p1099_p13, %p1098_p12 }
 0x2b4   :  { %p1101_p1 = pnand %p1100_p0, %p1094_p11 }
 0x2b6   :  { %1104 = shalt.err (!%p1101_p1)
}
 0x2b7   :  { %s1105_s5 = scalar_lea.hbm %s1280_s2, 32 }
 0x2b8   :  { %p1106_p2 = scmp.ne.s32.totalorder %s1280_s2, %s1105_s5  ;;  %p1109_p3 = scmp.lt.u32.totalorder %s1105_s5, %s1280_s2 }
 0x2ba   :  { %p1111_p4 = pnand %p1109_p3, %p1106_p2 }
 0x2bc   :  { %1114 = shalt.err (!%p1111_p4)
}
 0x2bd   :  { %1015 = dma.vmem_to_hbm [thread:$0]  %s1013_s19, 32, %s1280_s2, [#allocation12]  }
 0x2be   :  { %1119 = dma.done.wait [#allocation9], 32  }
 0x2bf   :  { %1120 = vsyncadd [#allocation9], 4294967264 }
 0x2c0   :  { %1121 = dma.done.wait [#allocation12], 32  }
 0x2c1   :  { %1122 = vsyncadd [#allocation12], 4294967264 }
 0x2c2   :  { %1018 = vsyncpa [#allocation9], 1 }
 0x2c3   :  { %1019 = vsyncpa [#allocation12], 1 }

// kernel: image_retrieval_forward.2
= control target key start
LH: loop header
LB: loop body
LE: loop exit
PB: predicated region body
PF: predicated region fallthrough
CT: control target
= control target key end

     0   :  { %vm22_vm0 = vcmask 1043456   ;;  %v163_v10 = vmov 0.0   ;;  %vm164_vm1 = vmmov 0   ;;  %v46_v12 = vlaneseq  ;;  %s205_s0 = inlined_call_operand.vmem [shape: f32[2,4,256], index: 0, kind: input, shape index: {}]   ;;  %s206_s1 = inlined_call_operand.vmem [shape: f32[4,32], index: 1, kind: input, shape index: {}]   ;;  %s207_s2 = inlined_call_operand.vmem [shape: f32[1,32], index: 2, kind: input, shape index: {}]   ;;  %s208_s3 = inlined_call_operand.vmem [shape: f32[2,32], index: 3, kind: output, shape index: {}]  }
   0x1   :  { %v14_v0 = vld [vmem:[%s205_s0] sm:$0xff]  ;;  %v15_v1 = vld [vmem:[%s205_s0 + $0x8] sm:$0xff]  ;;  %152 = vmatprep.subr.mxu0 %v163_v10  ;;  %154 = vmatprep.mubr.msk.f32.mxu0 %vm164_vm1, %v163_v10  ;;  %vm56_vm2 = vcmask 1041409   ;;  %vm58_vm3 = vcmask 31744   ;;  %vm135_vm4 = vcmask 254976  }
   0x2   :  { %v18_v2 = vcombine.high %v14_v0, %v14_v0  ;;  %v23_v3 = vsel %vm22_vm0, %v14_v0, 0.0  ;;  %v19_v4 = vcombine.high %v15_v1, %v15_v1  ;;  %v28_v6 = vsel %vm22_vm0, %v15_v1, 0.0  ;;  %v36_v11 = vld [vmem:[%s206_s1] sm:$0xf] }
   0x3   :  { %153 = vmatpush3.msk.msra.mxu0 %vm22_vm0, %v36_v11  ;;  %v47_v13 = vand.u32 127, %v46_v12  ;;  %v49_v14 = vshrl.u32 %v46_v12, 7  ;;  %v147_v23 = vld [vmem:[%s207_s2] ss:$0 sm:$0xff] }
   0x4   :  { %v24_v5 = vsel %vm22_vm0, %v18_v2, 0.0  ;;  %v29_v7 = vsel %vm22_vm0, %v19_v4, 0.0 }
   0x5   :  { %v25_v8 = vadd.f32 %v24_v5, %v23_v3  ;;  %v30_v9 = vadd.f32 %v29_v7, %v28_v6  ;;  %v50_v16 = vsub.s32 %v47_v13, %v49_v14 }
   0x7   :  { %26 = vadd.xlane.f32.xlu0 %v25_v8 }
   0xb   :  { %31 = vadd.xlane.f32.xlu0 %v30_v9 }
  0x94   :  { %v27_v15 = vpop.xlane.xlu0 %26 }
  0x95   :  { %v34_v17 = vmul.f32 0.00390625, %v27_v15 }
  0x97   :  { %v51_v20 = vrot.slane %v34_v17, %v50_v16 }
  0x98   :  { %v32_v18 = vpop.xlane.xlu0 %31 }
  0x99   :  { %v35_v19 = vmul.f32 0.00390625, %v32_v18 }
  0x9b   :  { %v55_v21 = vrot.slane %v35_v19, %v50_v16 }
  0x9d   :  { %v57_v22 = vsel %vm56_vm2, %v55_v21, %v51_v20 }
  0x9e   :  { %155 = vmatmul.mubr.msk.f32.vlgmr.msra.gmra.mrb[0].mxu0 %vm58_vm3, %v57_v22 }
 0x171   :  { %v130_v24 = vpop.f32.mrb[0].mxu0 }
 0x172   :  { %v131_v25 = vadd.f32 %v147_v23, %v130_v24  ;;  %v156_v26 = vpop.f32.mrb[1].mxu0 }
 0x174   :  { %v134_v27 = vmul.f32 %v131_v25, %v131_v25 }
 0x176   :  { %v136_v28 = vsel %vm135_vm4, %v134_v27, 0.0 }
 0x177   :  { %137 = vadd.xlane.f32.xlu1 %v136_v28 }
 0x204   :  { %v138_v29 = vpop.xlane.xlu1 %137 }
 0x205   :  { %v139_v30 = vadd.f32 1e-12, %v138_v29 }
 0x207   :  { %161 = vrsqrt.f32 %v139_v30 }
 0x211   :  { %v162_v31 = vpop.eup %161 }
 0x212   :  { %v141_v32 = vmul.f32 %v162_v31, %v131_v25 }
 0x214   :  { %142 = vst.msk [vmem:[%s208_s3] sm:$0x3] %vm135_vm4, %v141_v32 }

// kernel: image_retrieval_forward.3
= control target key start
LH: loop header
LB: loop body
LE: loop exit
PB: predicated region body
PF: predicated region fallthrough
CT: control target
= control target key end

     0   :  { %s1108_s0 = inlined_call_operand.vmem [shape: s32[2], index: 0, kind: input, shape index: {}]   ;;  %s1109_s1 = inlined_call_operand.vmem [shape: f32[2,32], index: 1, kind: input, shape index: {}]   ;;  %s1110_s2 = inlined_call_operand.vmem [shape: bf16[2048,32], index: 2, kind: input, shape index: {}]   ;;  %s1111_s3 = inlined_call_operand.vmem [shape: s32[1,2048], index: 3, kind: input, shape index: {}]   ;;  %s1112_s4 = inlined_call_operand.vmem [shape: s32[1,2048], index: 4, kind: input, shape index: {}]   ;;  %s1113_s5 = inlined_call_operand.vmem [shape: f32[2,2048], index: 5, kind: output, shape index: {}]  }
   0x1   :  { %s10_s20 = sshll.u32 %s1108_s0, 4  ;;  %s11_s20 = int_to_ptr.vmem [resolvable:$true] %s10_s20 }
   0x2   :  { %s939_s21 = scalar_lea.vmem %s11_s20, 16  ;;  %p944_p1 = scmp.lt.s32.totalorder %s11_s20, %s11_s20 }
   0x3   :  { %p940_p0 = scmp.ne.s32.totalorder %s11_s20, %s939_s21  ;;  %p945_p2 = scmp.lt.s32.totalorder %s939_s21, %s939_s21 }
   0x5   :  { %p946_p3 = por %p945_p2, %p944_p1 }
   0x7   :  { %p947_p4 = pnand %p946_p3, %p940_p0 }
   0x9   :  { %950 = shalt.err (!%p947_p4)  }
   0xa   :  { %s961_s22 = smov [#allocation3]  }
   0xb   :  { %13 = dma.vmem_to_smem %s11_s20, 16, %s961_s22, [#allocation2] }
   0xc   :  { %955 = dma.done.wait [#allocation2], 16 }
   0xd   :  { %956 = vsyncadd [#allocation2], 4294967280 }
   0xe   :  { %15 = sfence }
   0xf   :  { %s997_s23 = smov 0  }
  0x10 LB: > { %s796_s0 = sadd.s32 4294967295, %s959_s23   ;;  %p800_p5 = scmp.ge.s32.totalorder %s959_s23, 1  ;;  %s959_s23 = sphi %s997_s23, %s21_s23  }
  0x11   : > { %p190_p6 = scmp.lt.s32.totalorder %s959_s23, 5 }
  0x13   : > { %p191_p7 = pnand %p800_p5, %p190_p6 }
  0x14   : > { %s801_s24 = sshll.u32 (!%p191_p7), %s796_s0, 6  ;;  %v247_v0 = vld [vmem:[%s1109_s1] sm:$0x3] (!%p191_p7)  ;;  %vm473_vm0 = vcmask (!%p191_p7), 261120   ;;  %s803_s6 = sshll.u32 (!%p191_p7), %s796_s0, 2  ;;  %v675_v56 = vlaneseq (!%p191_p7)  ;;  %v962_v59 = vmov (!%p191_p7), 0  }
  0x15   : > { %194 = sbr.rel (%p191_p7) target bundleno = 320 (0x140), region = 36  ;;  %p225_p8 = scmp.lt.s32.totalorder (!%p191_p7), %s801_s24, 255  ;;  %v1010_v1 = vpack.c.bf16 (!%p191_p7), %v247_v0, %v247_v0  ;;  %v963_v0 = vmov (!%p191_p7), 1983009808  }
  0x16   : > { %s655_s7 = sld [smem:[#allocation3]] (!%p191_p7)  ;;  %s841_s8 = sld [smem:[#allocation3 + $0x1]] (!%p191_p7)  ;;  %v676_v57 = vshrl.u32 (!%p191_p7), %v675_v56, 7 }
  0x17   : > { %860 = vmatprep.mubr.msk.bf16.mxu0 (!%p191_p7), %vm473_vm0, %v1010_v1  ;;  %878 = vmatprep.mubr.msk.bf16.mxu1 (!%p191_p7), %vm473_vm0, %v1010_v1  ;;  %p231_p9 = scmp.lt.s32.totalorder (!%p191_p7), %s803_s6, 15 }
  0x18   : > { %v677_v58 = vsub.s32 (!%p191_p7), 0, %v676_v57  ;;  %v685_v61 = vsub.s32 (!%p191_p7), 2, %v676_v57  ;;  %v681_v62 = vsub.s32 (!%p191_p7), 1, %v676_v57  ;;  %v689_v63 = vsub.s32 (!%p191_p7), 3, %v676_v57 }
  0x1c   : > { %s1115_s24 = smov (!%p225_p8, %s801_s24), 255  ;;  %s1117_s6 = smov (!%p231_p9, %s803_s6), 15  ;;  %v659_v51 = vstv %s655_s7  ;;  %v667_v54 = vstv %s841_s8 }
  0x1d   : > { %s802_s27 = sshll.u32 %s1115_s24, 2  ;;  %p657_p10 = scmp.lt.s32.totalorder %s655_s7, 0 }
  0x1e   : > { %s1019_s30 = scalar_lea.vmem %s1110_s2, %s802_s27  ;;  %p665_p11 = scmp.lt.s32.totalorder %s841_s8, 0 }
  0x1f   : > { %v907_v2 = vld [vmem:[%s1019_s30 + $0x40] sm:$0xff]   ;;  %v911_v7 = vld [vmem:[%s1019_s30 + $0x48] sm:$0xff]   ;;  %v915_v13 = vld [vmem:[%s1019_s30 + $0x50] sm:$0xff]   ;;  %s233_s11 = scalar_lea.vmem %s1111_s3, %s1117_s6  ;;  %s238_s16 = scalar_lea.vmem %s1112_s4, %s1117_s6 }
  0x20   : > { %v908_v3 = vld [vmem:[%s1019_s30 + $0xc0] sm:$0xff]   ;;  %880 = vmatprep.subr.msk.bf16.mxu0 %vm473_vm0, %v907_v2  ;;  %v912_v9 = vld [vmem:[%s1019_s30 + $0xc8] sm:$0xff]   ;;  %v916_v15 = vld [vmem:[%s1019_s30 + $0xd0] sm:$0xff]   ;;  %s661_s12 = scalar_select %p657_p10, 1, 0 }
  0x21   : > { %v909_v4 = vld [vmem:[%s1019_s30] sm:$0xff]   ;;  %888 = vmatprep.subr.msk.bf16.mxu1 %vm473_vm0, %v908_v3  ;;  %v913_v10 = vld [vmem:[%s1019_s30 + $0x8] sm:$0xff]   ;;  %v917_v16 = vld [vmem:[%s1019_s30 + $0x10] sm:$0xff]   ;;  %s669_s13 = scalar_select %p665_p11, 1, 0 }
  0x22   : > { %v910_v5 = vld [vmem:[%s1019_s30 + $0x80] sm:$0xff]   ;;  %v478_v6 = vsel %vm473_vm0, %v909_v4, 0  ;;  %v914_v11 = vld [vmem:[%s1019_s30 + $0x88] sm:$0xff]   ;;  %v481_v12 = vsel %vm473_vm0, %v913_v10, 0  ;;  %v918_v17 = vld [vmem:[%s1019_s30 + $0x90] sm:$0xff]   ;;  %v484_v18 = vsel %vm473_vm0, %v917_v16, 0  ;;  %v662_v52 = vstv %s661_s12 }
  0x23   : > { %845 = vmatpush3.bf16.xpose.msra.mxu0 %v478_v6  ;;  %v526_v8 = vsel %vm473_vm0, %v910_v5, 0  ;;  %v529_v14 = vsel %vm473_vm0, %v914_v11, 0  ;;  %v919_v19 = vld [vmem:[%s1019_s30 + $0x58] sm:$0xff]   ;;  %v532_v20 = vsel %vm473_vm0, %v918_v17, 0  ;;  %v923_v25 = vld [vmem:[%s1019_s30 + $0x60] sm:$0xff]   ;;  %v927_v31 = vld [vmem:[%s1019_s30 + $0x68] sm:$0xff]   ;;  %v670_v55 = vstv %s669_s13 }
  0x24   : > { %863 = vmatpush3.bf16.xpose.msra.mxu1 %v526_v8  ;;  %881 = vmatprep.subr.msk.bf16.mxu0 %vm473_vm0, %v911_v7  ;;  %v920_v21 = vld [vmem:[%s1019_s30 + $0xd8] sm:$0xff]   ;;  %v924_v27 = vld [vmem:[%s1019_s30 + $0xe0] sm:$0xff]   ;;  %v928_v33 = vld [vmem:[%s1019_s30 + $0xe8] sm:$0xff]   ;;  %vm663_vm2 = vcmp.eq.s32.totalorder %v662_v52, 1  ;;  %vm671_vm4 = vcmp.eq.s32.totalorder %v670_v55, 1  ;;  %s806_s17 = sshll.u32 %s1117_s6, 1 }
  0x25   : > { %889 = vmatprep.subr.msk.bf16.mxu1 %vm473_vm0, %v912_v9  ;;  %v921_v22 = vld [vmem:[%s1019_s30 + $0x18] sm:$0xff]   ;;  %v925_v28 = vld [vmem:[%s1019_s30 + $0x20] sm:$0xff]   ;;  %v929_v34 = vld [vmem:[%s1019_s30 + $0x28] sm:$0xff]   ;;  %s244_s20 = scalar_lea.vmem %s1113_s5, %s806_s17 }
  0x26   : > { %v922_v23 = vld [vmem:[%s1019_s30 + $0x98] sm:$0xff]   ;;  %v487_v24 = vsel %vm473_vm0, %v921_v22, 0  ;;  %v926_v29 = vld [vmem:[%s1019_s30 + $0xa0] sm:$0xff]   ;;  %v490_v30 = vsel %vm473_vm0, %v925_v28, 0  ;;  %v930_v35 = vld [vmem:[%s1019_s30 + $0xa8] sm:$0xff]   ;;  %v493_v36 = vsel %vm473_vm0, %v929_v34, 0 }
  0x27   : > { %v535_v26 = vsel %vm473_vm0, %v922_v23, 0  ;;  %v538_v32 = vsel %vm473_vm0, %v926_v29, 0  ;;  %v931_v37 = vld [vmem:[%s1019_s30 + $0x70] sm:$0xff]   ;;  %v541_v38 = vsel %vm473_vm0, %v930_v35, 0  ;;  %v935_v43 = vld [vmem:[%s1019_s30 + $0x78] sm:$0xff]  }
  0x28   : > { %v932_v39 = vld [vmem:[%s1019_s30 + $0xf0] sm:$0xff]   ;;  %v936_v45 = vld [vmem:[%s1019_s30 + $0xf8] sm:$0xff]   ;;  %v658_v50 = vld [vmem:[%s233_s11] sm:$0xf] }
  0x29   : > { %v933_v40 = vld [vmem:[%s1019_s30 + $0x30] sm:$0xff]   ;;  %v937_v46 = vld [vmem:[%s1019_s30 + $0x38] sm:$0xff]   ;;  %v666_v53 = vld [vmem:[%s238_s16] sm:$0xf]  ;;  %vm660_vm1 = vcmp.eq.s32.totalorder %v658_v50, %v659_v51 }
  0x2a   : > { %v934_v41 = vld [vmem:[%s1019_s30 + $0xb0] sm:$0xff]   ;;  %v496_v42 = vsel %vm473_vm0, %v933_v40, 0  ;;  %v938_v47 = vld [vmem:[%s1019_s30 + $0xb8] sm:$0xff]   ;;  %v499_v48 = vsel %vm473_vm0, %v937_v46, 0  ;;  %vm668_vm3 = vcmp.eq.s32.totalorder %v666_v53, %v667_v54  ;;  %vm664_vm5 = vmor %vm663_vm2, %vm660_vm1 }
  0x2b   : > { %847 = vmatpush3.bf16.xpose.msra.mxu0 %v481_v12  ;;  %v544_v44 = vsel %vm473_vm0, %v934_v41, 0  ;;  %v547_v49 = vsel %vm473_vm0, %v938_v47, 0  ;;  %vm672_vm6 = vmor %vm671_vm4, %vm668_vm3 }
  0x2c   : > { %865 = vmatpush3.bf16.xpose.msra.mxu1 %v529_v14  ;;  %882 = vmatprep.subr.msk.bf16.mxu0 %vm473_vm0, %v915_v13  ;;  %vm673_vm7 = vmand %vm664_vm5, %vm672_vm6 }
  0x2d   : > { %890 = vmatprep.subr.msk.bf16.mxu1 %vm473_vm0, %v916_v15  ;;  %v674_v60 = vsel %vm673_vm7, 1, %v962_v59 }
  0x2e   : > { %v678_v2 = vrot.slane %v674_v60, %v677_v58  ;;  %v686_v3 = vrot.slane %v674_v60, %v685_v61  ;;  %v682_v4 = vrot.slane %v674_v60, %v681_v62  ;;  %v690_v5 = vrot.slane %v674_v60, %v689_v63 }
  0x30   : > { %vm691_vm8 = vcmp.eq.s32.totalorder %v678_v2, 1  ;;  %vm693_vm9 = vcmp.eq.s32.totalorder %v686_v3, 1  ;;  %vm692_vm10 = vcmp.eq.s32.totalorder %v682_v4, 1  ;;  %vm694_vm11 = vcmp.eq.s32.totalorder %v690_v5, 1 }
  0x33   : > { %849 = vmatpush3.bf16.xpose.msra.mxu0 %v484_v18 }
  0x34   : > { %867 = vmatpush3.bf16.xpose.msra.mxu1 %v532_v20  ;;  %883 = vmatprep.subr.msk.bf16.mxu0 %vm473_vm0, %v919_v19 }
  0x35   : > { %891 = vmatprep.subr.msk.bf16.mxu1 %vm473_vm0, %v920_v21 }
  0x3b   : > { %851 = vmatpush3.bf16.xpose.msra.mxu0 %v487_v24 }
  0x3c   : > { %869 = vmatpush3.bf16.xpose.msra.mxu1 %v535_v26  ;;  %884 = vmatprep.subr.msk.bf16.mxu0 %vm473_vm0, %v923_v25 }
  0x3d   : > { %892 = vmatprep.subr.msk.bf16.mxu1 %vm473_vm0, %v924_v27 }
  0x43   : > { %853 = vmatpush3.bf16.xpose.msra.mxu0 %v490_v30 }
  0x44   : > { %871 = vmatpush3.bf16.xpose.msra.mxu1 %v538_v32  ;;  %885 = vmatprep.subr.msk.bf16.mxu0 %vm473_vm0, %v927_v31 }
  0x45   : > { %893 = vmatprep.subr.msk.bf16.mxu1 %vm473_vm0, %v928_v33 }
  0x4b   : > { %855 = vmatpush3.bf16.xpose.msra.mxu0 %v493_v36 }
  0x4c   : > { %873 = vmatpush3.bf16.xpose.msra.mxu1 %v541_v38  ;;  %886 = vmatprep.subr.msk.bf16.mxu0 %vm473_vm0, %v931_v37 }
  0x4d   : > { %894 = vmatprep.subr.msk.bf16.mxu1 %vm473_vm0, %v932_v39 }
  0x53   : > { %857 = vmatpush3.bf16.xpose.msra.mxu0 %v496_v42 }
  0x54   : > { %875 = vmatpush3.bf16.xpose.msra.mxu1 %v544_v44  ;;  %887 = vmatprep.subr.msk.bf16.mxu0 %vm473_vm0, %v935_v43 }
  0x55   : > { %895 = vmatprep.subr.msk.bf16.mxu1 %vm473_vm0, %v936_v45 }
  0x5b   : > { %859 = vmatpush3.bf16.xpose.msra.mxu0 %v499_v48 }
  0x5c   : > { %877 = vmatpush3.bf16.xpose.msra.mxu1 %v547_v49 }
  0x62   : > { %861 = vmatmul.mubr.msk.bf16.vlgmr.msra.gmra.mrb[0].mxu0 %vm473_vm0, %v1010_v1 }
  0x63   : > { %879 = vmatmul.mubr.msk.bf16.vlgmr.msra.gmra.mrb[0].mxu1 %vm473_vm0, %v1010_v1  ;;  %v706_v1 = vunpack.c.l.s4 %v963_v0 }
  0x65   : > { %v707_v6 = vunpack.c.0.s8 %v706_v1 }
  0x67   : > { %v710_v11 = vsub.s32 %v707_v6, %v676_v57 }
 0x135   : > { %v607_v7 = vpop.f32.mrb[0].mxu0 }
 0x136   : > { %v695_v8 = vsel %vm691_vm8, %v607_v7, -inf  ;;  %v648_v9 = vpop.f32.mrb[0].mxu1  ;;  %v609_v10 = vpop.f32.mrb[1].mxu0 }
 0x137   : > { %v697_v12 = vsel %vm693_vm9, %v648_v9, -inf  ;;  %v696_v13 = vsel %vm692_vm10, %v609_v10, -inf  ;;  %v650_v14 = vpop.f32.mrb[1].mxu1  ;;  %v611_v15 = vpop.f32.mrb[2].mxu0 }
 0x138   : > { %v703_v16 = vcombine.low %v695_v8, %v696_v13  ;;  %v698_v17 = vsel %vm694_vm11, %v650_v14, -inf  ;;  %v652_v18 = vpop.f32.mrb[2].mxu1  ;;  %v612_v19 = vpop.f32.mrb[3].mxu0 }
 0x139   : > { %v704_v20 = vcombine.low %v697_v12, %v698_v17  ;;  %v653_v21 = vpop.f32.mrb[3].mxu1 }
 0x13a   : > { %v711_v22 = vrot.slane %v703_v16, %v710_v11 }
 0x13b   : > { %v718_v23 = vrot.slane %v704_v20, %v710_v11 }
 0x13d   : > { %v719_v24 = vcombine.low %v711_v22, %v718_v23 }
 0x13f   : > { %721 = vst [vmem:[%s244_s20] sm:$0xff] %v719_v24 }
 0x140 PF: > { %s21_s23 = sadd.s32 1, %s959_s23  }
 0x141   : > { %p18_p12 = scmp.ge.s32.totalorder %s21_s23, 6  }
 0x143   :  { %20 = sbr.rel (!%p18_p12) target bundleno = 16 (0x10), region = 72 }

</bundles_post_ra>
